<compile_context>
chip_gen: v6e
topology: v6e:2x2x1
jax: 0.10.0
libtpu: 0.0.40
codegen_flags: <defaults>
</compile_context>

<pallas_src>
import jax
import jax.numpy as jnp
from jax import lax
from jax.experimental import pallas as pl
from jax.experimental.pallas import tpu as pltpu

COMPUTE_DTYPE = jnp.bfloat16      # MXU input dtype (f32 accumulation everywhere)

_VMEM_LIMIT_CACHE = None


def _vmem_limit_bytes():
    """Generation-dependent VMEM budget: ~96 MiB on 128 MiB parts (v5e/v6e),
    48 MiB on 64 MiB parts (v7x)."""
    global _VMEM_LIMIT_CACHE
    if _VMEM_LIMIT_CACHE is None:
        try:
            cap = int(pltpu.get_tpu_info().vmem_capacity_bytes)
        except Exception:
            cap = 64 << 20
        _VMEM_LIMIT_CACHE = (96 << 20) if cap >= (128 << 20) else (48 << 20)
    return _VMEM_LIMIT_CACHE


def _lane_tile(n, candidates=(512, 256, 128)):
    """Last-dim tile: a multiple of 128 that divides n, else the full dim."""
    if n % 128 != 0:
        return n
    for c in candidates:
        if n % c == 0:
            return c
    return 128


def _t_tile(T, D):
    """Time tile for the lm_head (lane dim of the transposed logits store)."""
    if T % 128 != 0:
        return T
    if T % 256 == 0 and D <= 4096:
        return 256
    return 128


def _vocab_tile(V, D, tq, budget_bytes):
    """Vocab tile: bound (2x bf16 weight tile + 2x f32 logits-out tile) by budget."""
    if V % 128 != 0:
        return V
    for c in (8192, 4096, 2048, 1024, 512, 256, 128):
        if V % c == 0 and (2 * c * D * 2 + 2 * c * tq * 4) <= budget_bytes:
            return c
    # TODO(synk): for very large model dims (e.g. dim=16000) also tile the D
    # (contraction) axis instead of shrinking tv all the way down.
    return 128


# ---------------------------------------------------------------------------
# Kernels
# ---------------------------------------------------------------------------

def _mixer_stream_kernel(w_ref, b_ref, x_ref, o_ref, acc_ref):
    """One layer per innermost grid step: acc <- tril(W_l) @ acc + b_l.

    w_ref: (1, T, T) bf16 (tril pre-applied, streamed per layer)
    b_ref: (1, T, 1) bf16
    x_ref: (1, T, td) f32 (embeddings, resident across the layer axis)
    o_ref: (1, T, td) bf16 (written at the last layer)
    acc_ref: (T, td) f32 VMEM scratch carrying the activation across layers.
    """
    l = pl.program_id(2)

    @pl.when(l == 0)
    def _():
        acc_ref[...] = x_ref[0].astype(jnp.float32)

    w = w_ref[0]                                      # (T, T)  bf16
    xb = acc_ref[...].astype(jnp.bfloat16)            # (T, td) bf16 MXU input
    y = jnp.dot(w, xb, preferred_element_type=jnp.float32) \
        + b_ref[0].astype(jnp.float32)                # (T, td) f32
    acc_ref[...] = y

    @pl.when(l == pl.num_programs(2) - 1)
    def _():
        o_ref[0] = y.astype(o_ref.dtype)


def _lm_head_ce_kernel(x_ref, w_ref, lbl_ref, logits_ref, loss_ref,
                       m_ref, s_ref, tgt_ref):
    """Per vocab tile: logits tile in (vocab, time) orientation ('b e t' for free),
    online-LSE + target-logit accumulators in VMEM; per-token CE at the last tile."""
    vj = pl.program_id(2)
    nv = pl.num_programs(2)

    @pl.when(vj == 0)
    def _():
        m_ref[...] = jnp.full(m_ref.shape, -jnp.inf, jnp.float32)
        s_ref[...] = jnp.zeros(s_ref.shape, jnp.float32)
        tgt_ref[...] = jnp.zeros(tgt_ref.shape, jnp.float32)

    x = x_ref[0]                                      # (tq, D)  bf16
    w = w_ref[...]                                    # (tv, D)  bf16
    # Contract D with D -> (tv, tq): logits already in (vocab, time) layout, so
    # the module's 'b t e -> b e t' rearrange needs no XLA transpose.
    logits = lax.dot_general(w, x, (((1,), (1,)), ((), ())),
                             preferred_element_type=jnp.float32)   # (tv, tq) f32
    logits_ref[0] = logits.astype(logits_ref.dtype)

    tv, tq = logits.shape
    labels = lbl_ref[0]                               # (1, tq) int32 (pre-shifted)
    voc = lax.broadcasted_iota(jnp.int32, (tv, tq), 0) + vj * tv

    tile_max = jnp.max(logits, axis=0, keepdims=True)            # (1, tq)
    m_new = jnp.maximum(m_ref[...], tile_max)
    s_ref[...] = s_ref[...] * jnp.exp(m_ref[...] - m_new) + jnp.sum(
        jnp.exp(logits - m_new), axis=0, keepdims=True)
    m_ref[...] = m_new
    tgt_ref[...] += jnp.sum(jnp.where(voc == labels, logits, 0.0),
                            axis=0, keepdims=True)

    @pl.when(vj == nv - 1)
    def _():
        lse = m_ref[...] + jnp.log(s_ref[...])        # (1, tq)
        per_tok = lse - tgt_ref[...]
        # labels < 0 (shifted-out last row, or PyTorch ignore_index=-100) -> no loss
        loss_ref[0] = jnp.where(labels >= 0, per_tok, 0.0)


# ---------------------------------------------------------------------------
# pallas_call wrappers
# ---------------------------------------------------------------------------

def mixer_stack(x, w_stack, b_stack):
    """Fused causal token-mixing over all layers. x: (B, T, D) f32 -> (B, T, D) bf16."""
    B, T, D = x.shape
    L = w_stack.shape[0]
    td = _lane_tile(D)
    return pl.pallas_call(
        _mixer_stream_kernel,
        out_shape=jax.ShapeDtypeStruct((B, T, D), COMPUTE_DTYPE),
        grid=(B, D // td, L),
        in_specs=[
            pl.BlockSpec((1, T, T), lambda b, j, l: (l, 0, 0)),   # streamed per layer
            pl.BlockSpec((1, T, 1), lambda b, j, l: (l, 0, 0)),
            pl.BlockSpec((1, T, td), lambda b, j, l: (b, 0, j)),  # resident across layers
        ],
        out_specs=pl.BlockSpec((1, T, td), lambda b, j, l: (b, 0, j)),
        scratch_shapes=[pltpu.VMEM((T, td), jnp.float32)],        # activation carry
        compiler_params=pltpu.CompilerParams(
            dimension_semantics=("parallel", "parallel", "arbitrary"),
            vmem_limit_bytes=_vmem_limit_bytes()),
    )(w_stack, b_stack, x)


def lm_head_ce(x, w, shifted_labels):
    """Vocab/time-tiled lm_head with fused online-LSE cross entropy.

    x: (B, T, D) bf16, w: (V, D) bf16, shifted_labels: (B, 1, T) int32 (label[t+1] at
    column t, -1 where invalid).  Returns:
      logits in 'b e t' layout (B, V, T) f32, per-token loss (B, 1, T) f32 (invalid=0).
    """
    B, T, D = x.shape
    V = w.shape[0]
    vmem = _vmem_limit_bytes()
    tq = _t_tile(T, D)
    tv = _vocab_tile(V, D, tq, budget_bytes=vmem // 2)
    return pl.pallas_call(
        _lm_head_ce_kernel,
        out_shape=(jax.ShapeDtypeStruct((B, V, T), jnp.float32),
                   jax.ShapeDtypeStruct((B, 1, T), jnp.float32)),
        grid=(B, T // tq, V // tv),
        in_specs=[
            pl.BlockSpec((1, tq, D), lambda b, qi, vj: (b, qi, 0)),  # resident over vocab
            pl.BlockSpec((tv, D), lambda b, qi, vj: (vj, 0)),
            pl.BlockSpec((1, 1, tq), lambda b, qi, vj: (b, 0, qi)),
        ],
        out_specs=(
            pl.BlockSpec((1, tv, tq), lambda b, qi, vj: (b, vj, qi)),
            pl.BlockSpec((1, 1, tq), lambda b, qi, vj: (b, 0, qi)),
        ),
        scratch_shapes=[pltpu.VMEM((1, tq), jnp.float32)] * 3,   # m, sumexp, target logit
        compiler_params=pltpu.CompilerParams(
            dimension_semantics=("parallel", "parallel", "arbitrary"),
            vmem_limit_bytes=vmem),
    )(x, w, shifted_labels)


# ---------------------------------------------------------------------------
# Parameter prep (once, outside the per-step forward) + forward
# ---------------------------------------------------------------------------

def prepare_params(raw):
    """Tril-mask the conv weights and cast all matmul operands to bf16 once."""
    T = raw["blocks"][0][0].shape[0]
    mask = jnp.tril(jnp.ones((T, T), jnp.float32))
    w_stack = jnp.stack([w * mask for w, _ in raw["blocks"]]).astype(COMPUTE_DTYPE)
    b_stack = jnp.stack([b for _, b in raw["blocks"]]).reshape(-1, T, 1).astype(COMPUTE_DTYPE)
    return {
        "wte": raw["wte"],                                     # embedding stays f32
        "w_stack": w_stack,                                    # (L, T, T) bf16
        "b_stack": b_stack,                                    # (L, T, 1) bf16
        "lm_head_w": raw["lm_head_w"].astype(COMPUTE_DTYPE),   # (V, D)  bf16
    }


@jax.jit
def language_mixer_forward(input_ids, labels, params):
    x = jnp.take(params["wte"], input_ids, axis=0)             # (B, T, D) embedding gather (XLA glue)
    B, T, D = x.shape

    x = mixer_stack(x, params["w_stack"], params["b_stack"])   # (B, T, D) bf16, all layers fused

    # Next-token labels: column t pairs with labels[t+1]; last column -1 (masked),
    # negative labels (e.g. PyTorch ignore_index=-100) are also masked in-kernel.
    shifted = jnp.concatenate(
        [labels[:, 1:], jnp.full((B, 1), -1, labels.dtype)], axis=1).astype(jnp.int32)
    shifted = shifted.reshape(B, 1, T)

    logits_bet, per_tok = lm_head_ce(x, params["lm_head_w"], shifted)

    n_valid = jnp.maximum(jnp.sum(shifted >= 0), 1).astype(jnp.float32)
    loss = jnp.sum(per_tok) / n_valid                          # CrossEntropyLoss(reduction='mean')
    return loss, logits_bet                                    # logits already 'b e t'


# ---------------------------------------------------------------------------
# Pure-JAX reference (mirrors the kernel's bf16-input / f32-accumulate numerics)
# ---------------------------------------------------------------------------

def _reference_forward(input_ids, labels, raw):
    x = raw["wte"][input_ids]                                  # (B, T, D) f32
    T = x.shape[1]
    mask = jnp.tril(jnp.ones((T, T), jnp.float32))
    for conv_w, conv_b in raw["blocks"]:
        wm = (conv_w * mask).astype(COMPUTE_DTYPE)
        x = jnp.einsum("ts,bsd->btd", wm, x.astype(COMPUTE_DTYPE),
                       preferred_element_type=jnp.float32) \
            + conv_b.astype(COMPUTE_DTYPE).astype(jnp.float32)[None, :, None]
    logits = jnp.einsum("btd,vd->bvt", x.astype(COMPUTE_DTYPE),
                        raw["lm_head_w"].astype(COMPUTE_DTYPE),
                        preferred_element_type=jnp.float32)    # (B, V, T)
    shift_logits = logits[..., :-1]                            # (B, V, T-1)
    shift_labels = labels[:, 1:]                               # (B, T-1)
    lse = jax.scipy.special.logsumexp(shift_logits, axis=1)    # (B, T-1)
    tgt = jnp.take_along_axis(shift_logits, shift_labels[:, None, :], axis=1)[:, 0, :]
    loss = jnp.mean(lse - tgt)
    return loss, logits


if __name__ == "__main__":
    # Small shapes consistent with LanguageMixer(n_vocab, dim, depth); T = tokenized_length = 128.
    B, T, D, V, DEPTH = 2, 128, 256, 512, 2

    key = jax.random.PRNGKey(0)
    k_wte, k_lm, k_ids, *k_blocks = jax.random.split(key, 3 + 2 * DEPTH)

    raw_params = {
        "wte": jax.random.normal(k_wte, (V, D), jnp.float32) * 0.02,
        "lm_head_w": jax.random.normal(k_lm, (V, D), jnp.float32) * 0.02,
        "blocks": [
            (
                jax.random.normal(k_blocks[2 * i], (T, T), jnp.float32) * (1.0 / T),
                jax.random.normal(k_blocks[2 * i + 1], (T,), jnp.float32) * 0.01,
            )
            for i in range(DEPTH)
        ],
    }
    params = prepare_params(raw_params)

    input_ids = jax.random.randint(k_ids, (B, T), 0, V, dtype=jnp.int32)
    labels = input_ids  # language-model style labels

    loss, output = language_mixer_forward(input_ids, labels, params)
    loss = jax.block_until_ready(loss)
    output = jax.block_until_ready(output)

    ref_loss, ref_output = _reference_forward(input_ids, labels, raw_params)
    assert output.shape == (B, V, T), output.shape
    assert jnp.allclose(output, ref_output, atol=1e-3, rtol=1e-2), \
        float(jnp.max(jnp.abs(output - ref_output)))
    assert jnp.allclose(loss, ref_loss, atol=2e-3, rtol=1e-3), \
        (float(loss), float(ref_loss))

    print("KERNEL_OK")
</pallas_src>

<mosaic_0001>
module attributes {stable_mosaic.version = 11 : i64} {
  func.func @_lm_head_ce_kernel(%arg0: i32, %arg1: i32, %arg2: i32, %arg3: memref<1x128x256xbf16, #tpu.memory_space<vmem>>, %arg4: memref<512x256xbf16, #tpu.memory_space<vmem>>, %arg5: memref<1x1x128xi32, #tpu.memory_space<vmem>>, %arg6: memref<1x512x128xf32, #tpu.memory_space<vmem>>, %arg7: memref<1x1x128xf32, #tpu.memory_space<vmem>>, %arg8: memref<1x128xf32, #tpu.memory_space<vmem>>, %arg9: memref<1x128xf32, #tpu.memory_space<vmem>>, %arg10: memref<1x128xf32, #tpu.memory_space<vmem>>) attributes {dimension_semantics = [#tpu.dimension_semantics<parallel>, #tpu.dimension_semantics<parallel>, #tpu.dimension_semantics<arbitrary>], iteration_bounds = array<i64: 2, 1, 1>, scalar_prefetch = 0 : i64, scratch_operands = 3 : i64, tpu.core_type = #tpu.core_type<tc>, window_params = [{transform_indices = @transform_0, window_bounds = array<i64: 1, 128, 256>}, {transform_indices = @transform_1, window_bounds = array<i64: 512, 256>}, {transform_indices = @transform_2, window_bounds = array<i64: 1, 1, 128>}, {transform_indices = @transform_3, window_bounds = array<i64: 1, 512, 128>}, {transform_indices = @transform_4, window_bounds = array<i64: 1, 1, 128>}]} {
    %c0_i32 = arith.constant 0 : i32
    %0 = arith.cmpi eq, %arg2, %c0_i32 : i32
    %1 = arith.extui %0 : i1 to i32
    %c0_i32_0 = arith.constant 0 : i32
    %2 = arith.cmpi ne, %1, %c0_i32_0 : i32
    scf.if %2 {
      %cst_31 = arith.constant 0xFF800000 : f32
      %45 = vector.broadcast %cst_31 : f32 to vector<1x128xf32>
      %c0_32 = arith.constant 0 : index
      %c0_33 = arith.constant 0 : index
      %46 = vector.load %arg8[%c0_32, %c0_33] : memref<1x128xf32, #tpu.memory_space<vmem>>, vector<1x128xf32>
      tpu.vector_store %arg8[%c0_32, %c0_33], %45 {strides = array<i32>} : memref<1x128xf32, #tpu.memory_space<vmem>>, vector<1x128xf32>,
      %cst_34 = arith.constant 0.000000e+00 : f32
      %47 = vector.broadcast %cst_34 : f32 to vector<1x128xf32>
      %c0_35 = arith.constant 0 : index
      %c0_36 = arith.constant 0 : index
      %48 = vector.load %arg9[%c0_35, %c0_36] : memref<1x128xf32, #tpu.memory_space<vmem>>, vector<1x128xf32>
      tpu.vector_store %arg9[%c0_35, %c0_36], %47 {strides = array<i32>} : memref<1x128xf32, #tpu.memory_space<vmem>>, vector<1x128xf32>,
      %cst_37 = arith.constant 0.000000e+00 : f32
      %49 = vector.broadcast %cst_37 : f32 to vector<1x128xf32>
      %c0_38 = arith.constant 0 : index
      %c0_39 = arith.constant 0 : index
      %50 = vector.load %arg10[%c0_38, %c0_39] : memref<1x128xf32, #tpu.memory_space<vmem>>, vector<1x128xf32>
      tpu.vector_store %arg10[%c0_38, %c0_39], %49 {strides = array<i32>} : memref<1x128xf32, #tpu.memory_space<vmem>>, vector<1x128xf32>,
    } else {
    }
    %c0 = arith.constant 0 : index
    %c0_1 = arith.constant 0 : index
    %c0_2 = arith.constant 0 : index
    %3 = vector.load %arg3[%c0, %c0_1, %c0_2] : memref<1x128x256xbf16, #tpu.memory_space<vmem>>, vector<1x128x256xbf16>
    %4 = vector.shape_cast %3 : vector<1x128x256xbf16> to vector<128x256xbf16>
    %c0_3 = arith.constant 0 : index
    %c0_4 = arith.constant 0 : index
    %5 = vector.load %arg4[%c0_3, %c0_4] : memref<512x256xbf16, #tpu.memory_space<vmem>>, vector<512x256xbf16>
    %cst = arith.constant dense<0.000000e+00> : vector<512x128xf32>
    %6 = tpu.matmul %5, %4, %cst {dimension_numbers = #tpu.dot_dimension_numbers<[1], [1], [0], [0], [0, 0, 1, 0], [], []>} : vector<512x256xbf16>, vector<128x256xbf16>, vector<512x128xf32> -> vector<512x128xf32>
    %c0_5 = arith.constant 0 : index
    %c0_6 = arith.constant 0 : index
    %c0_7 = arith.constant 0 : index
    %7 = vector.load %arg6[%c0_5, %c0_6, %c0_7] : memref<1x512x128xf32, #tpu.memory_space<vmem>>, vector<1x512x128xf32>
    %8 = vector.shape_cast %7 : vector<1x512x128xf32> to vector<512x128xf32>
    %9 = vector.shape_cast %6 : vector<512x128xf32> to vector<1x512x128xf32>
    tpu.vector_store %arg6[%c0_5, %c0_6, %c0_7], %9 {strides = array<i32>} : memref<1x512x128xf32, #tpu.memory_space<vmem>>, vector<1x512x128xf32>,
    %c0_8 = arith.constant 0 : index
    %c0_9 = arith.constant 0 : index
    %c0_10 = arith.constant 0 : index
    %10 = vector.load %arg5[%c0_8, %c0_9, %c0_10] : memref<1x1x128xi32, #tpu.memory_space<vmem>>, vector<1x1x128xi32>
    %11 = vector.shape_cast %10 : vector<1x1x128xi32> to vector<1x128xi32>
    %12 = tpu.iota {dimensions = array<i32: 0>} : vector<512x128xi32>
    %c512_i32 = arith.constant 512 : i32
    %13 = arith.muli %arg2, %c512_i32 : i32
    %14 = vector.broadcast %13 : i32 to vector<512x128xi32>
    %15 = arith.addi %12, %14 : vector<512x128xi32>
    %cst_11 = arith.constant dense<0xFF800000> : vector<128xf32>
    %16 = vector.multi_reduction <maximumf>, %6, %cst_11 [0] : vector<512x128xf32> to vector<128xf32>
    %17 = vector.shape_cast %16 : vector<128xf32> to vector<1x128xf32>
    %c0_12 = arith.constant 0 : index
    %c0_13 = arith.constant 0 : index
    %18 = vector.load %arg8[%c0_12, %c0_13] : memref<1x128xf32, #tpu.memory_space<vmem>>, vector<1x128xf32>
    %19 = arith.maximumf %18, %17 : vector<1x128xf32>
    %c0_14 = arith.constant 0 : index
    %c0_15 = arith.constant 0 : index
    %20 = vector.load %arg9[%c0_14, %c0_15] : memref<1x128xf32, #tpu.memory_space<vmem>>, vector<1x128xf32>
    %c0_16 = arith.constant 0 : index
    %c0_17 = arith.constant 0 : index
    %21 = vector.load %arg8[%c0_16, %c0_17] : memref<1x128xf32, #tpu.memory_space<vmem>>, vector<1x128xf32>
    %22 = arith.subf %21, %19 : vector<1x128xf32>
    %23 = math.exp %22 : vector<1x128xf32>
    %24 = arith.mulf %20, %23 : vector<1x128xf32>
    %25 = vector.broadcast %19 : vector<1x128xf32> to vector<512x128xf32>
    %26 = arith.subf %6, %25 : vector<512x128xf32>
    %27 = math.exp %26 : vector<512x128xf32>
    %cst_18 = arith.constant dense<0.000000e+00> : vector<128xf32>
    %28 = vector.multi_reduction <add>, %27, %cst_18 [0] : vector<512x128xf32> to vector<128xf32>
    %29 = vector.shape_cast %28 : vector<128xf32> to vector<1x128xf32>
    %30 = arith.addf %24, %29 : vector<1x128xf32>
    %c0_19 = arith.constant 0 : index
    %c0_20 = arith.constant 0 : index
    %31 = vector.load %arg9[%c0_19, %c0_20] : memref<1x128xf32, #tpu.memory_space<vmem>>, vector<1x128xf32>
    tpu.vector_store %arg9[%c0_19, %c0_20], %30 {strides = array<i32>} : memref<1x128xf32, #tpu.memory_space<vmem>>, vector<1x128xf32>,
    %c0_21 = arith.constant 0 : index
    %c0_22 = arith.constant 0 : index
    %32 = vector.load %arg8[%c0_21, %c0_22] : memref<1x128xf32, #tpu.memory_space<vmem>>, vector<1x128xf32>
    tpu.vector_store %arg8[%c0_21, %c0_22], %19 {strides = array<i32>} : memref<1x128xf32, #tpu.memory_space<vmem>>, vector<1x128xf32>,
    %c0_23 = arith.constant 0 : index
    %c0_24 = arith.constant 0 : index
    %33 = vector.load %arg10[%c0_23, %c0_24] : memref<1x128xf32, #tpu.memory_space<vmem>>, vector<1x128xf32>
    %34 = vector.broadcast %11 : vector<1x128xi32> to vector<512x128xi32>
    %35 = arith.cmpi eq, %15, %34 : vector<512x128xi32>
    %cst_25 = arith.constant 0.000000e+00 : f32
    %36 = vector.broadcast %cst_25 : f32 to vector<512x128xf32>
    %37 = arith.select %35, %6, %36 : vector<512x128xi1>, vector<512x128xf32>
    %cst_26 = arith.constant dense<0.000000e+00> : vector<128xf32>
    %38 = vector.multi_reduction <add>, %37, %cst_26 [0] : vector<512x128xf32> to vector<128xf32>
    %39 = vector.shape_cast %38 : vector<128xf32> to vector<1x128xf32>
    %40 = arith.addf %33, %39 : vector<1x128xf32>
    %c0_27 = arith.constant 0 : index
    %c0_28 = arith.constant 0 : index
    %41 = vector.load %arg10[%c0_27, %c0_28] : memref<1x128xf32, #tpu.memory_space<vmem>>, vector<1x128xf32>
    tpu.vector_store %arg10[%c0_27, %c0_28], %40 {strides = array<i32>} : memref<1x128xf32, #tpu.memory_space<vmem>>, vector<1x128xf32>,
    %c0_i32_29 = arith.constant 0 : i32
    %42 = arith.cmpi eq, %arg2, %c0_i32_29 : i32
    %43 = arith.extui %42 : i1 to i32
    %c0_i32_30 = arith.constant 0 : i32
    %44 = arith.cmpi ne, %43, %c0_i32_30 : i32
    scf.if %44 {
      %c0_31 = arith.constant 0 : index
      %c0_32 = arith.constant 0 : index
      %45 = vector.load %arg8[%c0_31, %c0_32] : memref<1x128xf32, #tpu.memory_space<vmem>>, vector<1x128xf32>
      %c0_33 = arith.constant 0 : index
      %c0_34 = arith.constant 0 : index
      %46 = vector.load %arg9[%c0_33, %c0_34] : memref<1x128xf32, #tpu.memory_space<vmem>>, vector<1x128xf32>
      %47 = math.log %46 : vector<1x128xf32>
      %48 = arith.addf %45, %47 : vector<1x128xf32>
      %c0_35 = arith.constant 0 : index
      %c0_36 = arith.constant 0 : index
      %49 = vector.load %arg10[%c0_35, %c0_36] : memref<1x128xf32, #tpu.memory_space<vmem>>, vector<1x128xf32>
      %50 = arith.subf %48, %49 : vector<1x128xf32>
      %c0_i32_37 = arith.constant 0 : i32
      %51 = vector.broadcast %c0_i32_37 : i32 to vector<1x128xi32>
      %52 = arith.cmpi sge, %11, %51 : vector<1x128xi32>
      %cst_38 = arith.constant 0.000000e+00 : f32
      %53 = vector.broadcast %cst_38 : f32 to vector<1x128xf32>
      %54 = arith.select %52, %50, %53 : vector<1x128xi1>, vector<1x128xf32>
      %c0_39 = arith.constant 0 : index
      %c0_40 = arith.constant 0 : index
      %c0_41 = arith.constant 0 : index
      %55 = vector.load %arg7[%c0_39, %c0_40, %c0_41] : memref<1x1x128xf32, #tpu.memory_space<vmem>>, vector<1x1x128xf32>
      %56 = vector.shape_cast %55 : vector<1x1x128xf32> to vector<1x128xf32>
      %57 = vector.shape_cast %54 : vector<1x128xf32> to vector<1x1x128xf32>
      tpu.vector_store %arg7[%c0_39, %c0_40, %c0_41], %57 {strides = array<i32>} : memref<1x1x128xf32, #tpu.memory_space<vmem>>, vector<1x1x128xf32>,
    } else {
    }
    return
  }
  func.func @transform_0(%arg0: i32, %arg1: i32, %arg2: i32) -> (i32, i32, i32) {
    %c0_i32 = arith.constant 0 : i32
    %c0_i32_0 = arith.constant 0 : i32
    return %arg0, %arg1, %c0_i32 : i32, i32, i32
  }
  func.func @transform_1(%arg0: i32, %arg1: i32, %arg2: i32) -> (i32, i32) {
    %c0_i32 = arith.constant 0 : i32
    %c0_i32_0 = arith.constant 0 : i32
    return %arg2, %c0_i32 : i32, i32
  }
  func.func @transform_2(%arg0: i32, %arg1: i32, %arg2: i32) -> (i32, i32, i32) {
    %c0_i32 = arith.constant 0 : i32
    %c0_i32_0 = arith.constant 0 : i32
    return %arg0, %c0_i32, %arg1 : i32, i32, i32
  }
  func.func @transform_3(%arg0: i32, %arg1: i32, %arg2: i32) -> (i32, i32, i32) {
    %c0_i32 = arith.constant 0 : i32
    return %arg0, %arg2, %arg1 : i32, i32, i32
  }
  func.func @transform_4(%arg0: i32, %arg1: i32, %arg2: i32) -> (i32, i32, i32) {
    %c0_i32 = arith.constant 0 : i32
    %c0_i32_0 = arith.constant 0 : i32
    return %arg0, %c0_i32, %arg1 : i32, i32, i32
  }
}

module attributes {stable_mosaic.version = 11 : i64} {
  func.func @_mixer_stream_kernel(%arg0: i32, %arg1: i32, %arg2: i32, %arg3: memref<1x128x128xbf16, #tpu.memory_space<vmem>>, %arg4: memref<1x128x1xbf16, #tpu.memory_space<vmem>>, %arg5: memref<1x128x256xf32, #tpu.memory_space<vmem>>, %arg6: memref<1x128x256xbf16, #tpu.memory_space<vmem>>, %arg7: memref<128x256xf32, #tpu.memory_space<vmem>>) attributes {dimension_semantics = [#tpu.dimension_semantics<parallel>, #tpu.dimension_semantics<parallel>, #tpu.dimension_semantics<arbitrary>], iteration_bounds = array<i64: 2, 1, 2>, scalar_prefetch = 0 : i64, scratch_operands = 1 : i64, tpu.core_type = #tpu.core_type<tc>, window_params = [{transform_indices = @transform_0, window_bounds = array<i64: 1, 128, 128>}, {transform_indices = @transform_1, window_bounds = array<i64: 1, 128, 1>}, {transform_indices = @transform_2, window_bounds = array<i64: 1, 128, 256>}, {transform_indices = @transform_3, window_bounds = array<i64: 1, 128, 256>}]} {
    %c0_i32 = arith.constant 0 : i32
    %0 = arith.cmpi eq, %arg2, %c0_i32 : i32
    %1 = arith.extui %0 : i1 to i32
    %c0_i32_0 = arith.constant 0 : i32
    %2 = arith.cmpi ne, %1, %c0_i32_0 : i32
    scf.if %2 {
      %c0_11 = arith.constant 0 : index
      %c0_12 = arith.constant 0 : index
      %c0_13 = arith.constant 0 : index
      %17 = vector.load %arg5[%c0_11, %c0_12, %c0_13] : memref<1x128x256xf32, #tpu.memory_space<vmem>>, vector<1x128x256xf32>
      %18 = vector.shape_cast %17 : vector<1x128x256xf32> to vector<128x256xf32>
      %c0_14 = arith.constant 0 : index
      %c0_15 = arith.constant 0 : index
      %19 = vector.load %arg7[%c0_14, %c0_15] : memref<128x256xf32, #tpu.memory_space<vmem>>, vector<128x256xf32>
      tpu.vector_store %arg7[%c0_14, %c0_15], %18 {strides = array<i32>} : memref<128x256xf32, #tpu.memory_space<vmem>>, vector<128x256xf32>,
    } else {
    }
    %c0 = arith.constant 0 : index
    %c0_1 = arith.constant 0 : index
    %c0_2 = arith.constant 0 : index
    %3 = vector.load %arg3[%c0, %c0_1, %c0_2] : memref<1x128x128xbf16, #tpu.memory_space<vmem>>, vector<1x128x128xbf16>
    %4 = vector.shape_cast %3 : vector<1x128x128xbf16> to vector<128x128xbf16>
    %c0_3 = arith.constant 0 : index
    %c0_4 = arith.constant 0 : index
    %5 = vector.load %arg7[%c0_3, %c0_4] : memref<128x256xf32, #tpu.memory_space<vmem>>, vector<128x256xf32>
    %6 = arith.truncf %5 : vector<128x256xf32> to vector<128x256xbf16>
    %cst = arith.constant dense<0.000000e+00> : vector<128x256xf32>
    %7 = tpu.matmul %4, %6, %cst {dimension_numbers = #tpu.dot_dimension_numbers<[1], [0], [0], [1], [0, 0, 1, 1], [], []>} : vector<128x128xbf16>, vector<128x256xbf16>, vector<128x256xf32> -> vector<128x256xf32>
    %c0_5 = arith.constant 0 : index
    %c0_6 = arith.constant 0 : index
    %c0_7 = arith.constant 0 : index
    %8 = vector.load %arg4[%c0_5, %c0_6, %c0_7] : memref<1x128x1xbf16, #tpu.memory_space<vmem>>, vector<1x128x1xbf16>
    %9 = vector.shape_cast %8 : vector<1x128x1xbf16> to vector<128x1xbf16>
    %10 = arith.extf %9 : vector<128x1xbf16> to vector<128x1xf32>
    %11 = vector.broadcast %10 : vector<128x1xf32> to vector<128x256xf32>
    %12 = arith.addf %7, %11 : vector<128x256xf32>
    %c0_8 = arith.constant 0 : index
    %c0_9 = arith.constant 0 : index
    %13 = vector.load %arg7[%c0_8, %c0_9] : memref<128x256xf32, #tpu.memory_space<vmem>>, vector<128x256xf32>
    tpu.vector_store %arg7[%c0_8, %c0_9], %12 {strides = array<i32>} : memref<128x256xf32, #tpu.memory_space<vmem>>, vector<128x256xf32>,
    %c1_i32 = arith.constant 1 : i32
    %14 = arith.cmpi eq, %arg2, %c1_i32 : i32
    %15 = arith.extui %14 : i1 to i32
    %c0_i32_10 = arith.constant 0 : i32
    %16 = arith.cmpi ne, %15, %c0_i32_10 : i32
    scf.if %16 {
      %17 = arith.truncf %12 : vector<128x256xf32> to vector<128x256xbf16>
      %c0_11 = arith.constant 0 : index
      %c0_12 = arith.constant 0 : index
      %c0_13 = arith.constant 0 : index
      %18 = vector.load %arg6[%c0_11, %c0_12, %c0_13] : memref<1x128x256xbf16, #tpu.memory_space<vmem>>, vector<1x128x256xbf16>
      %19 = vector.shape_cast %18 : vector<1x128x256xbf16> to vector<128x256xbf16>
      %20 = vector.shape_cast %17 : vector<128x256xbf16> to vector<1x128x256xbf16>
      tpu.vector_store %arg6[%c0_11, %c0_12, %c0_13], %20 {strides = array<i32>} : memref<1x128x256xbf16, #tpu.memory_space<vmem>>, vector<1x128x256xbf16>,
    } else {
    }
    return
  }
  func.func @transform_0(%arg0: i32, %arg1: i32, %arg2: i32) -> (i32, i32, i32) {
    %c0_i32 = arith.constant 0 : i32
    %c0_i32_0 = arith.constant 0 : i32
    %c0_i32_1 = arith.constant 0 : i32
    return %arg2, %c0_i32, %c0_i32_0 : i32, i32, i32
  }
  func.func @transform_1(%arg0: i32, %arg1: i32, %arg2: i32) -> (i32, i32, i32) {
    %c0_i32 = arith.constant 0 : i32
    %c0_i32_0 = arith.constant 0 : i32
    %c0_i32_1 = arith.constant 0 : i32
    return %arg2, %c0_i32, %c0_i32_0 : i32, i32, i32
  }
  func.func @transform_2(%arg0: i32, %arg1: i32, %arg2: i32) -> (i32, i32, i32) {
    %c0_i32 = arith.constant 0 : i32
    %c0_i32_0 = arith.constant 0 : i32
    return %arg0, %c0_i32, %arg1 : i32, i32, i32
  }
  func.func @transform_3(%arg0: i32, %arg1: i32, %arg2: i32) -> (i32, i32, i32) {
    %c0_i32 = arith.constant 0 : i32
    %c0_i32_0 = arith.constant 0 : i32
    return %arg0, %c0_i32, %arg1 : i32, i32, i32
  }
}

</mosaic_0001>

<bundles_post_ra>
// kernel: language_mixer_forward.2
= control target key start
LH: loop header
LB: loop body
LE: loop exit
PB: predicated region body
PF: predicated region fallthrough
CT: control target
= control target key end

     0   :  { %s1196_s12 = smov 0   ;;  %s1198_s13 = smov 0   ;;  %s1429_s0 = inlined_call_operand.vmem [shape: bf16[2,128,128], index: 0, kind: input, shape index: {}]   ;;  %s1430_s1 = inlined_call_operand.vmem [shape: bf16[2,128,1], index: 1, kind: input, shape index: {}]   ;;  %s1431_s2 = inlined_call_operand.vmem [shape: f32[2,128,256], index: 2, kind: input, shape index: {}]   ;;  %s1432_s3 = inlined_call_operand.vmem [shape: bf16[2,128,256], index: 3, kind: output, shape index: {}]  }
   0x1   :  { %s1200_s14 = smov 0   ;;  %s1202_s15 = smov 0  }
   0x2   :  { %s1204_s16 = smov 0  }
   0x3 LB: > { %s25_s17 = sadd.s32 1, %s1165_s14  ;;  %s32_s18 = sadd.s32 1, %s1169_s15  ;;  %s1173_s16 = sphi %s1204_s16, %s13_s16   ;;  %s1169_s15 = sphi %s1202_s15, %s1436_s15   ;;  %s1165_s14 = sphi %s1200_s14, %s1435_s14   ;;  %s1161_s13 = sphi %s1198_s13, %s1434_s13   ;;  %s1157_s12 = sphi %s1196_s12, %s1433_s12  }
   0x4   : > { %p26_p0 = scmp.ge.s32.totalorder %s25_s17, 2  ;;  %p932_p1 = scmp.ge.s32.totalorder %s1173_s16, 1 }
   0x5   : > { %p185_p2 = scmp.lt.s32.totalorder %s1173_s16, 5 }
   0x6   : > { %s1438_s17 = smov (%p26_p0, %s25_s17), 0  ;;  %s1440_s18 = smov (!%p26_p0, %s32_s18), %s1169_s15 }
   0x7   : > { %p186_p3 = pnand %p932_p1, %p185_p2  ;;  %p34_p4 = scmp.ge.s32.totalorder %s1440_s18, 2 }
   0x8   : > { %p227_p5 = scmp.lt.s32.totalorder (!%p186_p3), %s1157_s12, 1  ;;  %p238_p6 = scmp.lt.s32.totalorder (!%p186_p3), %s1161_s13, 1 }
   0x9   : > { %s1442_s18 = smov (%p34_p4, %s1440_s18), 0  ;;  %189 = sbr.rel (%p186_p3) target bundleno = 314 (0x13a), region = 32 }
   0xa   : > { %p941_p7 = scmp.ne.s32.totalorder (!%p186_p3), %s1157_s12, 0 }
   0xe   : > { %s228_s19 = scalar_select %p227_p5, %s1157_s12, 1 }
   0xf   : > { %s1444_s13 = smov (!%p238_p6, %s1161_s13), 1  ;;  %261 = sbr.rel (%p941_p7) target bundleno = 37 (0x25), region = 36 }
  0x10   : > { %s969_s20 = sshll.u32 %s228_s19, 6  ;;  %s971_s27 = sshll.u32 %s1444_s13, 8 }
  0x11   : > { %s1233_s23 = scalar_lea.vmem %s1429_s0, %s969_s20  ;;  %s1238_s26 = scalar_lea.vmem %s1430_s1, %s969_s20 }
  0x12   : > { %s972_s28 = sshll.u32 %s1444_s13, 7  ;;  %s1243_s4 = scalar_lea.vmem %s1431_s2, %s971_s27 }
  0x13   : > { %s1248_s7 = scalar_lea.vmem %s1432_s3, %s972_s28 }
  0x14   : > { %v262_v0 = vld [vmem:[%s1243_s4] sm:$0xff]  ;;  %v263_v1 = vld [vmem:[%s1243_s4 + $0x8] sm:$0xff]  ;;  %v264_v2 = vld [vmem:[%s1243_s4 + $0x10] sm:$0xff] }
  0x15   : > { %294 = vst [vmem:[#allocation2 + $0xb0] sm:$0xff] %v262_v0  ;;  %295 = vst [vmem:[#allocation2] sm:$0xff] %v263_v1  ;;  %v265_v3 = vld [vmem:[%s1243_s4 + $0x18] sm:$0xff]  ;;  %v266_v4 = vld [vmem:[%s1243_s4 + $0x20] sm:$0xff] }
  0x16   : > { %296 = vst [vmem:[#allocation2 + $0xd8] sm:$0xff] %v264_v2  ;;  %v267_v5 = vld [vmem:[%s1243_s4 + $0x28] sm:$0xff]  ;;  %297 = vst [vmem:[#allocation2 + $0x18] sm:$0xff] %v265_v3  ;;  %v268_v6 = vld [vmem:[%s1243_s4 + $0x30] sm:$0xff] }
  0x17   : > { %298 = vst [vmem:[#allocation2 + $0x50] sm:$0xff] %v266_v4  ;;  %299 = vst [vmem:[#allocation2 + $0x68] sm:$0xff] %v267_v5  ;;  %v269_v7 = vld [vmem:[%s1243_s4 + $0x38] sm:$0xff]  ;;  %v270_v8 = vld [vmem:[%s1243_s4 + $0x40] sm:$0xff] }
  0x18   : > { %300 = vst [vmem:[#allocation2 + $0x30] sm:$0xff] %v268_v6  ;;  %301 = vst [vmem:[#allocation2 + $0x48] sm:$0xff] %v269_v7  ;;  %v271_v9 = vld [vmem:[%s1243_s4 + $0x48] sm:$0xff]  ;;  %v272_v10 = vld [vmem:[%s1243_s4 + $0x50] sm:$0xff] }
  0x19   : > { %302 = vst [vmem:[#allocation2 + $0x80] sm:$0xff] %v270_v8  ;;  %v273_v11 = vld [vmem:[%s1243_s4 + $0x58] sm:$0xff]  ;;  %303 = vst [vmem:[#allocation2 + $0x88] sm:$0xff] %v271_v9  ;;  %v274_v12 = vld [vmem:[%s1243_s4 + $0x60] sm:$0xff] }
  0x1a   : > { %304 = vst [vmem:[#allocation2 + $0xe8] sm:$0xff] %v272_v10  ;;  %305 = vst [vmem:[#allocation2 + $0xb8] sm:$0xff] %v273_v11  ;;  %v275_v13 = vld [vmem:[%s1243_s4 + $0x68] sm:$0xff]  ;;  %v276_v14 = vld [vmem:[%s1243_s4 + $0x70] sm:$0xff] }
  0x1b   : > { %306 = vst [vmem:[#allocation2 + $0x60] sm:$0xff] %v274_v12  ;;  %307 = vst [vmem:[#allocation2 + $0xf0] sm:$0xff] %v275_v13  ;;  %v277_v15 = vld [vmem:[%s1243_s4 + $0x78] sm:$0xff]  ;;  %v278_v16 = vld [vmem:[%s1243_s4 + $0x80] sm:$0xff] }
  0x1c   : > { %308 = vst [vmem:[#allocation2 + $0x8] sm:$0xff] %v276_v14  ;;  %v279_v17 = vld [vmem:[%s1243_s4 + $0x88] sm:$0xff]  ;;  %309 = vst [vmem:[#allocation2 + $0x78] sm:$0xff] %v277_v15  ;;  %v280_v18 = vld [vmem:[%s1243_s4 + $0x90] sm:$0xff] }
  0x1d   : > { %310 = vst [vmem:[#allocation2 + $0x38] sm:$0xff] %v278_v16  ;;  %311 = vst [vmem:[#allocation2 + $0x58] sm:$0xff] %v279_v17  ;;  %v281_v19 = vld [vmem:[%s1243_s4 + $0x98] sm:$0xff]  ;;  %v282_v20 = vld [vmem:[%s1243_s4 + $0xa0] sm:$0xff] }
  0x1e   : > { %312 = vst [vmem:[#allocation2 + $0x40] sm:$0xff] %v280_v18  ;;  %313 = vst [vmem:[#allocation2 + $0xc8] sm:$0xff] %v281_v19  ;;  %v283_v21 = vld [vmem:[%s1243_s4 + $0xa8] sm:$0xff]  ;;  %v284_v22 = vld [vmem:[%s1243_s4 + $0xb0] sm:$0xff] }
  0x1f   : > { %314 = vst [vmem:[#allocation2 + $0xe0] sm:$0xff] %v282_v20  ;;  %v285_v23 = vld [vmem:[%s1243_s4 + $0xb8] sm:$0xff]  ;;  %315 = vst [vmem:[#allocation2 + $0x90] sm:$0xff] %v283_v21  ;;  %v286_v24 = vld [vmem:[%s1243_s4 + $0xc0] sm:$0xff] }
  0x20   : > { %316 = vst [vmem:[#allocation2 + $0x70] sm:$0xff] %v284_v22  ;;  %317 = vst [vmem:[#allocation2 + $0xc0] sm:$0xff] %v285_v23  ;;  %v287_v25 = vld [vmem:[%s1243_s4 + $0xc8] sm:$0xff]  ;;  %v288_v26 = vld [vmem:[%s1243_s4 + $0xd0] sm:$0xff] }
  0x21   : > { %318 = vst [vmem:[#allocation2 + $0xa8] sm:$0xff] %v286_v24  ;;  %319 = vst [vmem:[#allocation2 + $0xd0] sm:$0xff] %v287_v25  ;;  %v289_v27 = vld [vmem:[%s1243_s4 + $0xd8] sm:$0xff]  ;;  %v290_v28 = vld [vmem:[%s1243_s4 + $0xe0] sm:$0xff] }
  0x22   : > { %320 = vst [vmem:[#allocation2 + $0x10] sm:$0xff] %v288_v26  ;;  %v291_v29 = vld [vmem:[%s1243_s4 + $0xe8] sm:$0xff]  ;;  %321 = vst [vmem:[#allocation2 + $0x28] sm:$0xff] %v289_v27  ;;  %v292_v30 = vld [vmem:[%s1243_s4 + $0xf0] sm:$0xff] }
  0x23   : > { %322 = vst [vmem:[#allocation2 + $0xa0] sm:$0xff] %v290_v28  ;;  %323 = vst [vmem:[#allocation2 + $0xf8] sm:$0xff] %v291_v29  ;;  %v293_v31 = vld [vmem:[%s1243_s4 + $0xf8] sm:$0xff] }
  0x24   : > { %324 = vst [vmem:[#allocation2 + $0x20] sm:$0xff] %v292_v30  ;;  %325 = vst [vmem:[#allocation2 + $0x98] sm:$0xff] %v293_v31 }
  0x25 PF: > { %v1175_v39 = vmov 0   ;;  %v359_v50 = vld [vmem:[#allocation2 + $0x58] sm:$0xff]  ;;  %v361_v51 = vld [vmem:[#allocation2 + $0xc8] sm:$0xff]  ;;  %v360_v55 = vld [vmem:[#allocation2 + $0x40] sm:$0xff]  ;;  %p950_p8 = scmp.ne.s32.totalorder %s1157_s12, 1 }
  0x26   : > { %582 = vmatprep.mubr.bf16.mxu0 %v1175_v39  ;;  %622 = vmatprep.mubr.bf16.mxu1 %v1175_v39  ;;  %v363_v44 = vld [vmem:[#allocation2 + $0x90] sm:$0xff]  ;;  %v362_v48 = vld [vmem:[#allocation2 + $0xe0] sm:$0xff]  ;;  %v383_v53 = vpack.c.bf16 %v361_v51, %v359_v50  ;;  %v358_v54 = vld [vmem:[#allocation2 + $0x38] sm:$0xff] }
  0x27   : > { %1085 = vset.pattern.permute.xlu0 %v1175_v39  ;;  %1096 = vset.pattern.permute.xlu1 %v1175_v39  ;;  %v365_v45 = vld [vmem:[#allocation2 + $0xc0] sm:$0xff]  ;;  %v364_v49 = vld [vmem:[#allocation2 + $0x70] sm:$0xff]  ;;  %v357_v57 = vld [vmem:[#allocation2 + $0x78] sm:$0xff]  ;;  %v382_v59 = vpack.c.bf16 %v360_v55, %v358_v54 }
  0x28   : > { %v367_v37 = vld [vmem:[#allocation2 + $0xd0] sm:$0xff]  ;;  %v366_v42 = vld [vmem:[#allocation2 + $0xa8] sm:$0xff]  ;;  %v385_v47 = vpack.c.bf16 %v365_v45, %v363_v44  ;;  %v384_v52 = vpack.c.bf16 %v364_v49, %v362_v48  ;;  %v354_v58 = vld [vmem:[#allocation2 + $0x60] sm:$0xff] }
  0x29   : > { %v369_v38 = vld [vmem:[#allocation2 + $0x28] sm:$0xff]  ;;  %v368_v43 = vld [vmem:[#allocation2 + $0x10] sm:$0xff]  ;;  %v353_v63 = vld [vmem:[#allocation2 + $0xb8] sm:$0xff] }
  0x2a   : > { %v371_v32 = vld [vmem:[#allocation2 + $0xf8] sm:$0xff]  ;;  %v370_v34 = vld [vmem:[#allocation2 + $0xa0] sm:$0xff]  ;;  %v387_v41 = vpack.c.bf16 %v369_v38, %v367_v37  ;;  %v386_v46 = vpack.c.bf16 %v368_v43, %v366_v42  ;;  %v355_v56 = vld [vmem:[#allocation2 + $0xf0] sm:$0xff] }
  0x2b   : > { %v373_v33 = vld [vmem:[#allocation2 + $0x98] sm:$0xff]  ;;  %v372_v36 = vld [vmem:[#allocation2 + $0x20] sm:$0xff]  ;;  %v356_v60 = vld [vmem:[#allocation2 + $0x8] sm:$0xff]  ;;  %v381_v61 = vpack.c.bf16 %v357_v57, %v355_v56 }
  0x2c   : > { %v389_v35 = vpack.c.bf16 %v373_v33, %v371_v32  ;;  %v388_v40 = vpack.c.bf16 %v372_v36, %v370_v34  ;;  %v351_v62 = vld [vmem:[#allocation2 + $0x88] sm:$0xff]  ;;  %v350_v0 = vld [vmem:[#allocation2 + $0x80] sm:$0xff]  ;;  %v380_v1 = vpack.c.bf16 %v356_v60, %v354_v58  ;;  %v1022_v11 = vld [vmem:[%s1238_s26 + $0x10] sm:$0xff]  }
  0x2d   : > { %v352_v2 = vld [vmem:[#allocation2 + $0xe8] sm:$0xff]  ;;  %v379_v3 = vpack.c.bf16 %v353_v63, %v351_v62  ;;  %v990_v6 = vld [vmem:[%s1238_s26] sm:$0xff]   ;;  %v999_v14 = vunpack.c.l.bf16 %v1022_v11  ;;  %v1000_v15 = vunpack.c.h.bf16 %v1022_v11  ;;  %v1023_v17 = vld [vmem:[%s1238_s26 + $0x18] sm:$0xff]  }
  0x2e   : > { %550 = vmatprep.subr.bf16.mxu0 %v389_v35  ;;  %1028 = vmatprep.subr.bf16.mxu1 %v389_v35  ;;  %v347_v4 = vld [vmem:[#allocation2 + $0x68] sm:$0xff]  ;;  %v378_v7 = vpack.c.bf16 %v352_v2, %v350_v0  ;;  %v991_v8 = vunpack.c.l.bf16 %v990_v6  ;;  %v992_v9 = vunpack.c.h.bf16 %v990_v6  ;;  %v1024_v16 = vld [vmem:[%s1238_s26 + $0x20] sm:$0xff]   ;;  %v346_v19 = vld [vmem:[#allocation2 + $0x50] sm:$0xff]  ;;  %v1003_v25 = vunpack.c.l.bf16 %v1023_v17 }
  0x2f   : > { %551 = vmatpush1.bf16.msra.mxu0 %v388_v40  ;;  %1036 = vmatpush1.bf16.msra.mxu1 %v388_v40  ;;  %v349_v5 = vld [vmem:[#allocation2 + $0x48] sm:$0xff]  ;;  %v348_v20 = vld [vmem:[#allocation2 + $0x30] sm:$0xff]  ;;  %v343_v22 = vld [vmem:[#allocation2] sm:$0xff]  ;;  %v1097_v24 = vpack.i.bf16 %v1000_v15, %v999_v14  ;;  %v1004_v26 = vunpack.c.h.bf16 %v1023_v17  ;;  %v1007_v28 = vunpack.c.l.bf16 %v1024_v16  ;;  %v1008_v29 = vunpack.c.h.bf16 %v1024_v16 }
  0x30   : > { %552 = vmatprep.subr.bf16.mxu0 %v387_v41  ;;  %1029 = vmatprep.subr.bf16.mxu1 %v387_v41  ;;  %v1021_v10 = vld [vmem:[%s1238_s26 + $0x8] sm:$0xff]   ;;  %v377_v18 = vpack.c.bf16 %v349_v5, %v347_v4  ;;  %v1086_v21 = vpack.i.bf16 %v992_v9, %v991_v8  ;;  %v345_v23 = vld [vmem:[#allocation2 + $0x18] sm:$0xff]  ;;  %v376_v31 = vpack.c.bf16 %v348_v20, %v346_v19  ;;  %v342_v33 = vld [vmem:[#allocation2 + $0xb0] sm:$0xff] }
  0x31   : > { %v995_v12 = vunpack.c.l.bf16 %v1021_v10  ;;  %v996_v13 = vunpack.c.h.bf16 %v1021_v10  ;;  %v1025_v30 = vld [vmem:[%s1238_s26 + $0x28] sm:$0xff]   ;;  %v375_v32 = vpack.c.bf16 %v345_v23, %v343_v22  ;;  %v344_v34 = vld [vmem:[#allocation2 + $0xd8] sm:$0xff]  ;;  %1098 = vperm.xlu1 %1096, %v1097_v24   ;;  %v1102_v35 = vpack.i.bf16 %v1004_v26, %v1003_v25  ;;  %v1026_v38 = vld [vmem:[%s1238_s26 + $0x30] sm:$0xff]  }
  0x32   : > { %1087 = vperm.xlu0 %1085, %v1086_v21   ;;  %v1011_v36 = vunpack.c.l.bf16 %v1025_v30  ;;  %v1012_v37 = vunpack.c.h.bf16 %v1025_v30  ;;  %v1107_v40 = vpack.i.bf16 %v1008_v29, %v1007_v28  ;;  %v1027_v41 = vld [vmem:[%s1238_s26 + $0x38] sm:$0xff]   ;;  %v374_v42 = vpack.c.bf16 %v344_v34, %v342_v33  ;;  %v1127_v48 = vld [vmem:[%s1233_s23] sm:$0xff]   ;;  %v1131_v54 = vld [vmem:[%s1233_s23 + $0x10] sm:$0xff]  }
  0x33   : > { %553 = vmatpush1.bf16.msra.mxu0 %v386_v46  ;;  %1037 = vmatpush1.bf16.msra.mxu1 %v386_v46  ;;  %v1091_v27 = vpack.i.bf16 %v996_v13, %v995_v12  ;;  %v1015_v43 = vunpack.c.l.bf16 %v1026_v38  ;;  %v1016_v44 = vunpack.c.h.bf16 %v1026_v38  ;;  %v1019_v46 = vunpack.c.l.bf16 %v1027_v41  ;;  %v1128_v49 = vld [vmem:[%s1233_s23 + $0x20] sm:$0xff]   ;;  %v1132_v55 = vld [vmem:[%s1233_s23 + $0x30] sm:$0xff]   ;;  %v1133_v56 = vld [vmem:[%s1233_s23 + $0x18] sm:$0xff]  }
  0x34   : > { %554 = vmatprep.subr.bf16.mxu0 %v385_v47  ;;  %1030 = vmatprep.subr.bf16.mxu1 %v385_v47  ;;  %v1112_v45 = vpack.i.bf16 %v1012_v37, %v1011_v36  ;;  %v1020_v47 = vunpack.c.h.bf16 %v1027_v41  ;;  %v1134_v57 = vld [vmem:[%s1233_s23 + $0x38] sm:$0xff]  }
  0x35   : > { %1103 = vperm.xlu1 %1096, %v1102_v35   ;;  %v1117_v50 = vpack.i.bf16 %v1016_v44, %v1015_v43 }
  0x36   : > { %1092 = vperm.xlu0 %1085, %v1091_v27   ;;  %v1122_v51 = vpack.i.bf16 %v1020_v47, %v1019_v46 }
  0x37   : > { %555 = vmatpush1.bf16.msra.mxu0 %v384_v52  ;;  %1038 = vmatpush1.bf16.msra.mxu1 %v384_v52  ;;  %v1129_v52 = vld [vmem:[%s1233_s23 + $0x8] sm:$0xff]  }
  0x38   : > { %556 = vmatprep.subr.bf16.mxu0 %v383_v53  ;;  %1031 = vmatprep.subr.bf16.mxu1 %v383_v53  ;;  %v1130_v53 = vld [vmem:[%s1233_s23 + $0x28] sm:$0xff]  }
  0x39   : > { %1113 = vperm.xlu1 %1096, %v1112_v45  }
  0x3a   : > { %1108 = vperm.xlu0 %1085, %v1107_v40  }
  0x3b   : > { %557 = vmatpush1.bf16.msra.mxu0 %v382_v59  ;;  %1039 = vmatpush1.bf16.msra.mxu1 %v382_v59 }
  0x3c   : > { %558 = vmatprep.subr.bf16.mxu0 %v381_v61  ;;  %1032 = vmatprep.subr.bf16.mxu1 %v381_v61 }
  0x3d   : > { %1123 = vperm.xlu1 %1096, %v1122_v51  }
  0x3e   : > { %1118 = vperm.xlu0 %1085, %v1117_v50  }
  0x3f   : > { %559 = vmatpush1.bf16.msra.mxu0 %v380_v1  ;;  %1040 = vmatpush1.bf16.msra.mxu1 %v380_v1 }
  0x40   : > { %560 = vmatprep.subr.bf16.mxu0 %v379_v3  ;;  %1033 = vmatprep.subr.bf16.mxu1 %v379_v3 }
  0x43   : > { %561 = vmatpush1.bf16.msra.mxu0 %v378_v7  ;;  %1041 = vmatpush1.bf16.msra.mxu1 %v378_v7 }
  0x44   : > { %562 = vmatprep.subr.bf16.mxu0 %v377_v18  ;;  %1034 = vmatprep.subr.bf16.mxu1 %v377_v18 }
  0x47   : > { %563 = vmatpush1.bf16.msra.mxu0 %v376_v31  ;;  %1042 = vmatpush1.bf16.msra.mxu1 %v376_v31 }
  0x48   : > { %564 = vmatprep.subr.bf16.mxu0 %v375_v32  ;;  %1035 = vmatprep.subr.bf16.mxu1 %v375_v32 }
  0x4b   : > { %565 = vmatpush1.bf16.msra.mxu0 %v374_v42  ;;  %1043 = vmatpush1.bf16.msra.mxu1 %v374_v42 }
  0x4e   : > { %583 = vmatmul.mubr.bf16.vlgmr.msra.gmra.mxu0 %v1127_v48  ;;  %623 = vmatmul.mubr.bf16.vlgmr.msra.gmra.mxu1 %v1128_v49 }
  0x4f   : > { %592 = vmatprep.mubr.bf16.mxu0 %v1175_v39  ;;  %632 = vmatprep.mubr.bf16.mxu1 %v1175_v39 }
  0x56   : > { %593 = vmatmul.mubr.bf16.gmra.mxu0 %v1129_v52  ;;  %633 = vmatmul.mubr.bf16.gmra.mxu1 %v1130_v53 }
  0x57   : > { %602 = vmatprep.mubr.bf16.mxu0 %v1175_v39  ;;  %642 = vmatprep.mubr.bf16.mxu1 %v1175_v39 }
  0x5e   : > { %603 = vmatmul.mubr.bf16.gmra.mxu0 %v1131_v54  ;;  %643 = vmatmul.mubr.bf16.gmra.mxu1 %v1132_v55 }
  0x5f   : > { %612 = vmatprep.mubr.bf16.mxu0 %v1175_v39  ;;  %652 = vmatprep.mubr.bf16.mxu1 %v1175_v39 }
  0x66   : > { %613 = vmatmul.mubr.bf16.gmra.mxu0 %v1133_v56  ;;  %653 = vmatmul.mubr.bf16.gmra.mxu1 %v1134_v57 }
  0xac   : > { %v1309_v60 = vpop.permute.xlu1 %1098 }
  0xad   : > { %v1088_v58 = vpop.permute.xlu0 %1087  ;;  %v1100_v34 = vunpack.i.l.bf16 %v1309_v60  ;;  %v1101_v49 = vunpack.i.h.bf16 %v1309_v60 }
  0xae   : > { %v1089_v63 = vunpack.i.l.bf16 %v1088_v58  ;;  %v1090_v3 = vunpack.i.h.bf16 %v1088_v58 }
  0xb0   : > { %v1311_v62 = vpop.permute.xlu1 %1103 }
  0xb1   : > { %v1093_v59 = vpop.permute.xlu0 %1092  ;;  %v1105_v60 = vunpack.i.l.bf16 %v1311_v62 }
  0xb2   : > { %v1094_v13 = vunpack.i.l.bf16 %v1093_v59  ;;  %v1095_v23 = vunpack.i.h.bf16 %v1093_v59 }
  0xb4   : > { %v1114_v6 = vpop.permute.xlu1 %1113 }
  0xb5   : > { %v1109_v61 = vpop.permute.xlu0 %1108  ;;  %v1115_v16 = vunpack.i.l.bf16 %v1114_v6  ;;  %v1116_v24 = vunpack.i.h.bf16 %v1114_v6 }
  0xb6   : > { %v1110_v0 = vunpack.i.l.bf16 %v1109_v61  ;;  %v1111_v4 = vunpack.i.h.bf16 %v1109_v61 }
  0xb8   : > { %v1124_v51 = vpop.permute.xlu1 %1123 }
  0xb9   : > { %v1119_v27 = vpop.permute.xlu0 %1118  ;;  %v1125_v61 = vunpack.i.l.bf16 %v1124_v51 }
  0xba   : > { %v1120_v37 = vunpack.i.l.bf16 %v1119_v27  ;;  %v1121_v50 = vunpack.i.h.bf16 %v1119_v27 }
 0x10e   : > { %v584_v1 = vpop.f32.mrf.mxu0  ;;  %v624_v2 = vpop.f32.mrf.mxu1 }
 0x10f   : > { %v1313_v5 = vadd.f32 %v1089_v63, %v584_v1  ;;  %v1315_v39 = vadd.f32 %v1110_v0, %v624_v2 }
 0x110   : > { %v586_v7 = vpop.f32.mrf.mxu0  ;;  %v626_v8 = vpop.f32.mrf.mxu1 }
 0x111   : > { %663 = vst [vmem:[#allocation2 + $0xb0] sm:$0xff] %v1313_v5  ;;  %679 = vst [vmem:[#allocation2 + $0x38] sm:$0xff] %v1315_v39  ;;  %v1319_v9 = vadd.f32 %v1089_v63, %v586_v7  ;;  %v1321_v10 = vadd.f32 %v1110_v0, %v626_v8  ;;  %v1106_v8 = vunpack.i.h.bf16 %v1311_v62 }
 0x112   : > { %v588_v11 = vpop.f32.mrf.mxu0  ;;  %v628_v12 = vpop.f32.mrf.mxu1 }
 0x113   : > { %664 = vst [vmem:[#allocation2] sm:$0xff] %v1319_v9  ;;  %680 = vst [vmem:[#allocation2 + $0x58] sm:$0xff] %v1321_v10  ;;  %v1325_v14 = vadd.f32 %v1090_v3, %v588_v11  ;;  %v1327_v15 = vadd.f32 %v1111_v4, %v628_v12  ;;  %v1126_v11 = vunpack.i.h.bf16 %v1124_v51 }
 0x114   : > { %v590_v17 = vpop.f32.mrf.mxu0  ;;  %v630_v18 = vpop.f32.mrf.mxu1 }
 0x115   : > { %665 = vst [vmem:[#allocation2 + $0xd8] sm:$0xff] %v1325_v14  ;;  %681 = vst [vmem:[#allocation2 + $0x40] sm:$0xff] %v1327_v15  ;;  %v1331_v19 = vadd.f32 %v1090_v3, %v590_v17  ;;  %v1333_v20 = vadd.f32 %v1111_v4, %v630_v18 }
 0x116   : > { %v594_v21 = vpop.f32.mrf.mxu0  ;;  %v634_v22 = vpop.f32.mrf.mxu1 }
 0x117   : > { %666 = vst [vmem:[#allocation2 + $0x18] sm:$0xff] %v1331_v19  ;;  %682 = vst [vmem:[#allocation2 + $0xc8] sm:$0xff] %v1333_v20  ;;  %v1337_v25 = vadd.f32 %v1094_v13, %v594_v21  ;;  %v1339_v26 = vadd.f32 %v1115_v16, %v634_v22 }
 0x118   : > { %v596_v28 = vpop.f32.mrf.mxu0  ;;  %v636_v29 = vpop.f32.mrf.mxu1 }
 0x119   : > { %667 = vst [vmem:[#allocation2 + $0x50] sm:$0xff] %v1337_v25  ;;  %683 = vst [vmem:[#allocation2 + $0xe0] sm:$0xff] %v1339_v26  ;;  %v1343_v30 = vadd.f32 %v1094_v13, %v596_v28  ;;  %v1345_v31 = vadd.f32 %v1115_v16, %v636_v29 }
 0x11a   : > { %v598_v32 = vpop.f32.mrf.mxu0  ;;  %v638_v33 = vpop.f32.mrf.mxu1 }
 0x11b   : > { %668 = vst [vmem:[#allocation2 + $0x68] sm:$0xff] %v1343_v30  ;;  %684 = vst [vmem:[#allocation2 + $0x90] sm:$0xff] %v1345_v31  ;;  %v1350_v35 = vadd.f32 %v1095_v23, %v598_v32  ;;  %v1352_v36 = vadd.f32 %v1116_v24, %v638_v33 }
 0x11c   : > { %v600_v38 = vpop.f32.mrf.mxu0  ;;  %v640_v40 = vpop.f32.mrf.mxu1 }
 0x11d   : > { %669 = vst [vmem:[#allocation2 + $0x30] sm:$0xff] %v1350_v35  ;;  %685 = vst [vmem:[#allocation2 + $0x70] sm:$0xff] %v1352_v36  ;;  %v1356_v41 = vadd.f32 %v1095_v23, %v600_v38  ;;  %v1358_v42 = vadd.f32 %v1116_v24, %v640_v40 }
 0x11e   : > { %v604_v43 = vpop.f32.mrf.mxu0  ;;  %v644_v44 = vpop.f32.mrf.mxu1 }
 0x11f   : > { %670 = vst [vmem:[#allocation2 + $0x48] sm:$0xff] %v1356_v41  ;;  %686 = vst [vmem:[#allocation2 + $0xc0] sm:$0xff] %v1358_v42  ;;  %v1362_v45 = vadd.f32 %v1100_v34, %v604_v43  ;;  %v1364_v46 = vadd.f32 %v1120_v37, %v644_v44 }
 0x120   : > { %v606_v47 = vpop.f32.mrf.mxu0  ;;  %v646_v48 = vpop.f32.mrf.mxu1 }
 0x121   : > { %671 = vst [vmem:[#allocation2 + $0x80] sm:$0xff] %v1362_v45  ;;  %687 = vst [vmem:[#allocation2 + $0xa8] sm:$0xff] %v1364_v46  ;;  %v607_v52 = vadd.f32 %v1100_v34, %v606_v47  ;;  %v1369_v53 = vadd.f32 %v1120_v37, %v646_v48 }
 0x122   : > { %v608_v54 = vpop.f32.mrf.mxu0  ;;  %v648_v55 = vpop.f32.mrf.mxu1 }
 0x123   : > { %672 = vst [vmem:[#allocation2 + $0x88] sm:$0xff] %v607_v52  ;;  %688 = vst [vmem:[#allocation2 + $0xd0] sm:$0xff] %v1369_v53  ;;  %v609_v56 = vadd.f32 %v1101_v49, %v608_v54  ;;  %v1372_v57 = vadd.f32 %v1121_v50, %v648_v55 }
 0x124   : > { %v610_v58 = vpop.f32.mrf.mxu0  ;;  %v650_v59 = vpop.f32.mrf.mxu1 }
 0x125   : > { %673 = vst [vmem:[#allocation2 + $0xe8] sm:$0xff] %v609_v56  ;;  %689 = vst [vmem:[#allocation2 + $0x10] sm:$0xff] %v1372_v57  ;;  %v611_v63 = vadd.f32 %v1101_v49, %v610_v58  ;;  %v651_v0 = vadd.f32 %v1121_v50, %v650_v59 }
 0x126   : > { %v614_v1 = vpop.f32.mrf.mxu0  ;;  %v654_v2 = vpop.f32.mrf.mxu1 }
 0x127   : > { %674 = vst [vmem:[#allocation2 + $0xb8] sm:$0xff] %v611_v63  ;;  %690 = vst [vmem:[#allocation2 + $0x28] sm:$0xff] %v651_v0  ;;  %v615_v3 = vadd.f32 %v1105_v60, %v614_v1  ;;  %v655_v4 = vadd.f32 %v1125_v61, %v654_v2 }
 0x128   : > { %v616_v6 = vpop.f32.mrf.mxu0  ;;  %v656_v7 = vpop.f32.mrf.mxu1 }
 0x129   : > { %675 = vst [vmem:[#allocation2 + $0x60] sm:$0xff] %v615_v3  ;;  %691 = vst [vmem:[#allocation2 + $0xa0] sm:$0xff] %v655_v4  ;;  %v617_v12 = vadd.f32 %v1105_v60, %v616_v6  ;;  %v657_v13 = vadd.f32 %v1125_v61, %v656_v7 }
 0x12a   : > { %v618_v16 = vpop.f32.mrf.mxu0  ;;  %v658_v17 = vpop.f32.mrf.mxu1 }
 0x12b   : > { %676 = vst [vmem:[#allocation2 + $0xf0] sm:$0xff] %v617_v12  ;;  %692 = vst [vmem:[#allocation2 + $0xf8] sm:$0xff] %v657_v13  ;;  %v619_v18 = vadd.f32 %v1106_v8, %v618_v16  ;;  %v659_v21 = vadd.f32 %v1126_v11, %v658_v17  ;;  %698 = sbr.rel (%p950_p8) target bundleno = 314 (0x13a), region = 40 }
 0x12c   : > { %v620_v22 = vpop.f32.mrf.mxu0  ;;  %v660_v23 = vpop.f32.mrf.mxu1 }
 0x12d   : > { %677 = vst [vmem:[#allocation2 + $0x8] sm:$0xff] %v619_v18  ;;  %693 = vst [vmem:[#allocation2 + $0x20] sm:$0xff] %v659_v21  ;;  %v621_v24 = vadd.f32 %v1106_v8, %v620_v22  ;;  %v661_v27 = vadd.f32 %v1126_v11, %v660_v23 }
 0x12f   : > { %678 = vst [vmem:[#allocation2 + $0x78] sm:$0xff] %v621_v24  ;;  %694 = vst [vmem:[#allocation2 + $0x98] sm:$0xff] %v661_v27 }
 0x130   : > { %v973_v62 = vpack.c.bf16 %v1319_v9, %v1313_v5  ;;  %v974_v28 = vpack.c.bf16 %v1331_v19, %v1325_v14  ;;  %v975_v29 = vpack.c.bf16 %v1343_v30, %v1337_v25  ;;  %v976_v32 = vpack.c.bf16 %v1356_v41, %v1350_v35 }
 0x131   : > { %v977_v33 = vpack.c.bf16 %v607_v52, %v1362_v45  ;;  %v978_v34 = vpack.c.bf16 %v611_v63, %v609_v56  ;;  %v979_v37 = vpack.c.bf16 %v617_v12, %v615_v3  ;;  %v980_v38 = vpack.c.bf16 %v621_v24, %v619_v18 }
 0x132   : > { %795 = vst [vmem:[%s1248_s7] sm:$0xff] %v973_v62  ;;  %796 = vst [vmem:[%s1248_s7 + $0x8] sm:$0xff] %v974_v28  ;;  %v981_v5 = vpack.c.bf16 %v1321_v10, %v1315_v39  ;;  %v982_v9 = vpack.c.bf16 %v1333_v20, %v1327_v15  ;;  %v983_v14 = vpack.c.bf16 %v1345_v31, %v1339_v26 }
 0x133   : > { %797 = vst [vmem:[%s1248_s7 + $0x10] sm:$0xff] %v975_v29  ;;  %798 = vst [vmem:[%s1248_s7 + $0x18] sm:$0xff] %v976_v32  ;;  %v984_v19 = vpack.c.bf16 %v1358_v42, %v1352_v36  ;;  %v985_v39 = vpack.c.bf16 %v1369_v53, %v1364_v46  ;;  %v986_v10 = vpack.c.bf16 %v651_v0, %v1372_v57 }
 0x134   : > { %799 = vst [vmem:[%s1248_s7 + $0x20] sm:$0xff] %v977_v33  ;;  %800 = vst [vmem:[%s1248_s7 + $0x28] sm:$0xff] %v978_v34  ;;  %v987_v25 = vpack.c.bf16 %v657_v13, %v655_v4  ;;  %v988_v15 = vpack.c.bf16 %v661_v27, %v659_v21 }
 0x135   : > { %801 = vst [vmem:[%s1248_s7 + $0x30] sm:$0xff] %v979_v37  ;;  %802 = vst [vmem:[%s1248_s7 + $0x38] sm:$0xff] %v980_v38 }
 0x136   : > { %803 = vst [vmem:[%s1248_s7 + $0x40] sm:$0xff] %v981_v5  ;;  %804 = vst [vmem:[%s1248_s7 + $0x48] sm:$0xff] %v982_v9 }
 0x137   : > { %805 = vst [vmem:[%s1248_s7 + $0x50] sm:$0xff] %v983_v14  ;;  %806 = vst [vmem:[%s1248_s7 + $0x58] sm:$0xff] %v984_v19 }
 0x138   : > { %807 = vst [vmem:[%s1248_s7 + $0x60] sm:$0xff] %v985_v39  ;;  %808 = vst [vmem:[%s1248_s7 + $0x68] sm:$0xff] %v986_v10 }
 0x139   : > { %809 = vst [vmem:[%s1248_s7 + $0x70] sm:$0xff] %v987_v25  ;;  %810 = vst [vmem:[%s1248_s7 + $0x78] sm:$0xff] %v988_v15 }
 0x13a PF: > { %s13_s16 = sadd.s32 1, %s1173_s16   ;;  %s1433_s12 = smov %s1165_s14 }
 0x13b   : > { %p10_p9 = scmp.ge.s32.totalorder %s13_s16, 6   ;;  %s1434_s13 = smov %s1169_s15 }
 0x13c   : > { %s1435_s14 = smov %s1438_s17  ;;  %s1436_s15 = smov %s1442_s18 }
 0x13d   :  { %12 = sbr.rel (!%p10_p9) target bundleno = 3 (0x3), region = 76 }

// kernel: language_mixer_forward.3
= control target key start
LH: loop header
LB: loop body
LE: loop exit
PB: predicated region body
PF: predicated region fallthrough
CT: control target
= control target key end

     0   :  { %10 = vsyncpa [#allocation6], 0  ;;  %s3580_s0 = inlined_call_operand.vmem [shape: bf16[2,128,256], index: 0, kind: input, shape index: {}]   ;;  %s3581_s1 = inlined_call_operand.vmem [shape: bf16[512,256], index: 1, kind: input, shape index: {}]   ;;  %s3582_s2 = inlined_call_operand.vmem [shape: s32[2,1,128], index: 2, kind: input, shape index: {}]   ;;  %s3583_s3 = inlined_call_operand.hbm [shape: f32[2,512,128], index: 3, kind: output, shape index: {0}]   ;;  %s3584_s4 = inlined_call_operand.vmem [shape: f32[2,1,128], index: 4, kind: output, shape index: {1}]  }
   0x1   :  { %12 = vsyncpa [#allocation6 + $0x1], 0  ;;  %s2543_s15 = smov 0   ;;  %s2545_s16 = smov 0  }
   0x2   :  { %s2547_s17 = smov 0   ;;  %s2549_s18 = smov 0  }
   0x3   :  { %s2551_s19 = smov 0   ;;  %s2553_s20 = smov 0  }
   0x4 LB: > { %s2007_s21 = sadd.s32 4294967295, %s2511_s20   ;;  %s2008_s22 = sadd.s32 4294967294, %s2511_s20   ;;  %s2511_s20 = sphi %s2553_s20, %s18_s20   ;;  %s2507_s19 = sphi %s2551_s19, %s3666_s19   ;;  %s2503_s18 = sphi %s2549_s18, %s3665_s18   ;;  %s2499_s17 = sphi %s2547_s17, %s3664_s17   ;;  %s2495_s16 = sphi %s2545_s16, %s3663_s16   ;;  %s2491_s15 = sphi %s2543_s15, %s3662_s15  }
   0x5   : > { %s37_s23 = sadd.s32 1, %s2507_s19  ;;  %s130_s24 = sadd.s32 1, %s2499_s17 }
   0x6   : > { %p39_p0 = scmp.ge.s32.totalorder %s37_s23, 2  ;;  %p140_p1 = scmp.ne.s32.totalorder %s2499_s17, %s2495_s16 }
   0x7   : > { %p141_p2 = scmp.eq.s32.totalorder %s2007_s21, 1  ;;  %p146_p3 = scmp.ne.s32.totalorder %s2495_s16, %s2491_s15 }
   0x8   : > { %s3668_s23 = smov (%p39_p0, %s37_s23), 0  ;;  %p147_p5 = scmp.eq.s32.totalorder %s2008_s22, 1 }
   0x9   : > { %p2583_p4 = por %p141_p2, %p140_p1  ;;  %s123_s26 = ssub.s32 %s2507_s19, %s3668_s23 }
   0xa   : > { %p2012_p6 = scmp.ge.s32.totalorder %s2511_s20, 1  ;;  %p128_p7 = scmp.eq.s32.totalorder %s123_s26, 0 }
   0xb   : > { %p2590_p8 = por %p147_p5, %p146_p3  ;;  %p226_p9 = scmp.lt.s32.totalorder %s2511_s20, 3 }
   0xc   : > { %s2596_s28 = scalar_select %p128_p7, %s2499_s17, %s130_s24  }
   0xd   : > { %p227_p10 = pnand %p2012_p6, %p226_p9 }
   0xf   : > { %230 = sbr.rel (%p227_p10) target bundleno = 651 (0x28b), region = 32 }
  0x14   : > { %p276_p11 = scmp.lt.s32.totalorder %s2503_s18, 1  ;;  %v2204_v0 = vld [vmem:[%s3581_s1 + $0x4] ss:$8 sps:$4 sm:$0xff]   ;;  %v2202_v18 = vld [vmem:[%s3581_s1] ss:$8 sps:$4 sm:$0xff]   ;;  %s264_s22 = sand.u32 1, %s2495_s16  }
  0x15   : > { %826 = vmatprep.mubr.bf16.mxu0 %v2204_v0  ;;  %v2210_v1 = vld [vmem:[%s3581_s1 + $0x104] ss:$8 sps:$4 sm:$0xff]   ;;  %v2208_v19 = vld [vmem:[%s3581_s1 + $0x100] ss:$8 sps:$4 sm:$0xff]   ;;  %v2205_v20 = vld [vmem:[%s3581_s1 + $0x14] ss:$8 sps:$4 sm:$0xff]  }
  0x16   : > { %s2603_s5 = scalar_select %p276_p11, %s2503_s18, 1  ;;  %954 = vmatprep.mubr.bf16.mxu1 %v2210_v1  ;;  %v2214_v21 = vld [vmem:[%s3581_s1 + $0x114] ss:$8 sps:$4 sm:$0xff]   ;;  %v2207_v22 = vld [vmem:[%s3581_s1 + $0x10] ss:$8 sps:$4 sm:$0xff]  }
  0x17   : > { %v2216_v23 = vld [vmem:[%s3581_s1 + $0x110] ss:$8 sps:$4 sm:$0xff]   ;;  %v2211_v24 = vld [vmem:[%s3581_s1 + $0x24] ss:$8 sps:$4 sm:$0xff]   ;;  %v2213_v26 = vld [vmem:[%s3581_s1 + $0x20] ss:$8 sps:$4 sm:$0xff]  }
  0x18   : > { %s2101_s8 = sshll.u32 %s2603_s5, 7  ;;  %v2220_v25 = vld [vmem:[%s3581_s1 + $0x124] ss:$8 sps:$4 sm:$0xff]   ;;  %v2222_v27 = vld [vmem:[%s3581_s1 + $0x120] ss:$8 sps:$4 sm:$0xff]   ;;  %s2013_s24 = sshll.u32 %s264_s22, 9 }
  0x19   : > { %s2612_s11 = scalar_lea.vmem %s3580_s0, %s2101_s8  ;;  %v2217_v28 = vld [vmem:[%s3581_s1 + $0x34] ss:$8 sps:$4 sm:$0xff]   ;;  %v2219_v30 = vld [vmem:[%s3581_s1 + $0x30] ss:$8 sps:$4 sm:$0xff]   ;;  %v2223_v32 = vld [vmem:[%s3581_s1 + $0x44] ss:$8 sps:$4 sm:$0xff]   ;;  %s2931_s6 = scalar_lea.vmem %s3582_s2, %s2603_s5 }
  0x1a   : > { %v2178_v2 = vld [vmem:[%s2612_s11 + $0x74] ss:$8 sps:$4 sm:$0xff]   ;;  %v2180_v3 = vld [vmem:[%s2612_s11 + $0x70] ss:$8 sps:$4 sm:$0xff]   ;;  %v2181_v4 = vld [vmem:[%s2612_s11 + $0x64] ss:$8 sps:$4 sm:$0xff]  }
  0x1b   : > { %794 = vmatprep.subr.bf16.mxu0 %v2178_v2  ;;  %2103 = vmatprep.subr.bf16.mxu1 %v2178_v2  ;;  %v2183_v5 = vld [vmem:[%s2612_s11 + $0x60] ss:$8 sps:$4 sm:$0xff]   ;;  %v2184_v6 = vld [vmem:[%s2612_s11 + $0x54] ss:$8 sps:$4 sm:$0xff]   ;;  %v2186_v7 = vld [vmem:[%s2612_s11 + $0x50] ss:$8 sps:$4 sm:$0xff]  }
  0x1c   : > { %795 = vmatpush1.bf16.xpose.msra.mxu0 %v2180_v3  ;;  %2111 = vmatpush1.bf16.xpose.msra.mxu1 %v2180_v3  ;;  %v2187_v8 = vld [vmem:[%s2612_s11 + $0x44] ss:$8 sps:$4 sm:$0xff]   ;;  %v2189_v9 = vld [vmem:[%s2612_s11 + $0x40] ss:$8 sps:$4 sm:$0xff]   ;;  %v2190_v10 = vld [vmem:[%s2612_s11 + $0x34] ss:$8 sps:$4 sm:$0xff]  }
  0x1d   : > { %796 = vmatprep.subr.bf16.mxu0 %v2181_v4  ;;  %2104 = vmatprep.subr.bf16.mxu1 %v2181_v4  ;;  %v2192_v11 = vld [vmem:[%s2612_s11 + $0x30] ss:$8 sps:$4 sm:$0xff]   ;;  %v2193_v12 = vld [vmem:[%s2612_s11 + $0x24] ss:$8 sps:$4 sm:$0xff]   ;;  %v2195_v13 = vld [vmem:[%s2612_s11 + $0x20] ss:$8 sps:$4 sm:$0xff]  }
  0x1e   : > { %v2196_v14 = vld [vmem:[%s2612_s11 + $0x14] ss:$8 sps:$4 sm:$0xff]   ;;  %v2198_v15 = vld [vmem:[%s2612_s11 + $0x10] ss:$8 sps:$4 sm:$0xff]   ;;  %v2199_v16 = vld [vmem:[%s2612_s11 + $0x4] ss:$8 sps:$4 sm:$0xff]  }
  0x1f   : > { %v2201_v17 = vld [vmem:[%s2612_s11] ss:$8 sps:$4 sm:$0xff]   ;;  %v2226_v29 = vld [vmem:[%s3581_s1 + $0x134] ss:$8 sps:$4 sm:$0xff]   ;;  %v2228_v31 = vld [vmem:[%s3581_s1 + $0x130] ss:$8 sps:$4 sm:$0xff]  }
  0x20   : > { %v2232_v33 = vld [vmem:[%s3581_s1 + $0x144] ss:$8 sps:$4 sm:$0xff]   ;;  %v2225_v34 = vld [vmem:[%s3581_s1 + $0x40] ss:$8 sps:$4 sm:$0xff]   ;;  %v2229_v36 = vld [vmem:[%s3581_s1 + $0x54] ss:$8 sps:$4 sm:$0xff]  }
  0x21   : > { %v2234_v35 = vld [vmem:[%s3581_s1 + $0x140] ss:$8 sps:$4 sm:$0xff]   ;;  %v2238_v37 = vld [vmem:[%s3581_s1 + $0x154] ss:$8 sps:$4 sm:$0xff]   ;;  %v2231_v38 = vld [vmem:[%s3581_s1 + $0x50] ss:$8 sps:$4 sm:$0xff]  }
  0x22   : > { %v2240_v39 = vld [vmem:[%s3581_s1 + $0x150] ss:$8 sps:$4 sm:$0xff]   ;;  %v2235_v40 = vld [vmem:[%s3581_s1 + $0x64] ss:$8 sps:$4 sm:$0xff]   ;;  %v2237_v42 = vld [vmem:[%s3581_s1 + $0x60] ss:$8 sps:$4 sm:$0xff]  }
  0x23   : > { %v2244_v41 = vld [vmem:[%s3581_s1 + $0x164] ss:$8 sps:$4 sm:$0xff]   ;;  %v2246_v43 = vld [vmem:[%s3581_s1 + $0x160] ss:$8 sps:$4 sm:$0xff]   ;;  %v2241_v44 = vld [vmem:[%s3581_s1 + $0x74] ss:$8 sps:$4 sm:$0xff]  }
  0x24   : > { %797 = vmatpush1.bf16.xpose.msra.mxu0 %v2183_v5  ;;  %2112 = vmatpush1.bf16.xpose.msra.mxu1 %v2183_v5  ;;  %v2250_v45 = vld [vmem:[%s3581_s1 + $0x174] ss:$8 sps:$4 sm:$0xff]   ;;  %v2243_v46 = vld [vmem:[%s3581_s1 + $0x70] ss:$8 sps:$4 sm:$0xff]   ;;  %v2247_v48 = vld [vmem:[%s3581_s1 + $0x84] ss:$8 sps:$4 sm:$0xff]  }
  0x25   : > { %798 = vmatprep.subr.bf16.mxu0 %v2184_v6  ;;  %2105 = vmatprep.subr.bf16.mxu1 %v2184_v6  ;;  %v2252_v47 = vld [vmem:[%s3581_s1 + $0x170] ss:$8 sps:$4 sm:$0xff]   ;;  %v2256_v49 = vld [vmem:[%s3581_s1 + $0x184] ss:$8 sps:$4 sm:$0xff]   ;;  %v2249_v50 = vld [vmem:[%s3581_s1 + $0x80] ss:$8 sps:$4 sm:$0xff]  }
  0x26   : > { %v2258_v51 = vld [vmem:[%s3581_s1 + $0x180] ss:$8 sps:$4 sm:$0xff]   ;;  %v2253_v52 = vld [vmem:[%s3581_s1 + $0x94] ss:$8 sps:$4 sm:$0xff]   ;;  %v2255_v54 = vld [vmem:[%s3581_s1 + $0x90] ss:$8 sps:$4 sm:$0xff]  }
  0x27   : > { %v2262_v53 = vld [vmem:[%s3581_s1 + $0x194] ss:$8 sps:$4 sm:$0xff]   ;;  %v2264_v55 = vld [vmem:[%s3581_s1 + $0x190] ss:$8 sps:$4 sm:$0xff]   ;;  %v2259_v56 = vld [vmem:[%s3581_s1 + $0xa4] ss:$8 sps:$4 sm:$0xff]  }
  0x28   : > { %v2268_v57 = vld [vmem:[%s3581_s1 + $0x1a4] ss:$8 sps:$4 sm:$0xff]   ;;  %v2261_v58 = vld [vmem:[%s3581_s1 + $0xa0] ss:$8 sps:$4 sm:$0xff]   ;;  %v2265_v60 = vld [vmem:[%s3581_s1 + $0xb4] ss:$8 sps:$4 sm:$0xff]  }
  0x29   : > { %v2270_v59 = vld [vmem:[%s3581_s1 + $0x1a0] ss:$8 sps:$4 sm:$0xff]   ;;  %v2274_v61 = vld [vmem:[%s3581_s1 + $0x1b4] ss:$8 sps:$4 sm:$0xff]   ;;  %v2267_v62 = vld [vmem:[%s3581_s1 + $0xb0] ss:$8 sps:$4 sm:$0xff]  }
  0x2a   : > { %v2276_v63 = vld [vmem:[%s3581_s1 + $0x1b0] ss:$8 sps:$4 sm:$0xff]   ;;  %v2271_v0 = vld [vmem:[%s3581_s1 + $0xc4] ss:$8 sps:$4 sm:$0xff]   ;;  %v2273_v2 = vld [vmem:[%s3581_s1 + $0xc0] ss:$8 sps:$4 sm:$0xff]  }
  0x2b   : > { %v2280_v1 = vld [vmem:[%s3581_s1 + $0x1c4] ss:$8 sps:$4 sm:$0xff]   ;;  %v2282_v3 = vld [vmem:[%s3581_s1 + $0x1c0] ss:$8 sps:$4 sm:$0xff]   ;;  %v2277_v4 = vld [vmem:[%s3581_s1 + $0xd4] ss:$8 sps:$4 sm:$0xff]  }
  0x2c   : > { %799 = vmatpush1.bf16.xpose.msra.mxu0 %v2186_v7  ;;  %2113 = vmatpush1.bf16.xpose.msra.mxu1 %v2186_v7  ;;  %v2286_v5 = vld [vmem:[%s3581_s1 + $0x1d4] ss:$8 sps:$4 sm:$0xff]   ;;  %v2279_v6 = vld [vmem:[%s3581_s1 + $0xd0] ss:$8 sps:$4 sm:$0xff]   ;;  %s2823_s26 = scalar_lea.vmem [#allocation5], %s2013_s24  ;;  %s2102_s7 = sshll.u32 %s2503_s18, 13 }
  0x2d   : > { %800 = vmatprep.subr.bf16.mxu0 %v2187_v8  ;;  %2106 = vmatprep.subr.bf16.mxu1 %v2187_v8  ;;  %v2288_v7 = vld [vmem:[%s3581_s1 + $0x1d0] ss:$8 sps:$4 sm:$0xff]   ;;  %v2283_v8 = vld [vmem:[%s3581_s1 + $0xe4] ss:$8 sps:$4 sm:$0xff]   ;;  %s3454_s10 = scalar_lea.hbm %s3583_s3, %s2102_s7  ;;  %s1865_s11 = sshll.u32 %s2823_s26, 4  ;;  %s3457_s11 = int_to_ptr.vmem [resolvable:$true] %s1865_s11 }
  0x2e   : > { %s3463_s18 = scalar_lea.sflag [#allocation6], %s264_s22  ;;  %s2435_s12 = scalar_lea.vmem %s3457_s11, 8192 }
  0x2f   : > { %p2436_p12 = scmp.ne.s32.totalorder %s3457_s11, %s2435_s12  ;;  %s2515_s13 = smov [#allocation5]  }
  0x30   : > { %s2439_s14 = sshll.u32 %s2515_s13, 4  ;;  %s2440_s14 = int_to_ptr.vmem [resolvable:$false] %s2439_s14 }
  0x31   : > { %p2437_p13 = pnand %p2436_p12, %p2583_p4  ;;  %s2441_s21 = scalar_lea.vmem %s2440_s14, 16384 }
  0x32   : > { %p2442_p1 = scmp.lt.s32.totalorder %s3457_s11, %s2440_s14  ;;  %p2443_p2 = scmp.lt.s32.totalorder %s2441_s21, %s2435_s12 }
  0x33   : > { %p2438_p0 = pneg %p2437_p13 }
  0x34   : > { %801 = vmatpush1.bf16.xpose.msra.mxu0 %v2189_v9  ;;  %2114 = vmatpush1.bf16.xpose.msra.mxu1 %v2189_v9  ;;  %v2292_v9 = vld [vmem:[%s3581_s1 + $0x1e4] ss:$8 sps:$4 sm:$0xff]   ;;  %p2444_p3 = por %p2443_p2, %p2442_p1 }
  0x35   : > { %802 = vmatprep.subr.bf16.mxu0 %v2190_v10  ;;  %2107 = vmatprep.subr.bf16.mxu1 %v2190_v10  ;;  %v2285_v10 = vld [vmem:[%s3581_s1 + $0xe0] ss:$8 sps:$4 sm:$0xff]  }
  0x36   : > { %p2445_p5 = pnand %p2444_p3, %p2438_p0 }
  0x3c   : > { %803 = vmatpush1.bf16.xpose.msra.mxu0 %v2192_v11  ;;  %2115 = vmatpush1.bf16.xpose.msra.mxu1 %v2192_v11  ;;  %v2294_v11 = vld [vmem:[%s3581_s1 + $0x1e0] ss:$8 sps:$4 sm:$0xff]  }
  0x3d   : > { %804 = vmatprep.subr.bf16.mxu0 %v2193_v12  ;;  %2108 = vmatprep.subr.bf16.mxu1 %v2193_v12  ;;  %v2289_v12 = vld [vmem:[%s3581_s1 + $0xf4] ss:$8 sps:$4 sm:$0xff]  }
  0x44   : > { %805 = vmatpush1.bf16.xpose.msra.mxu0 %v2195_v13  ;;  %2116 = vmatpush1.bf16.xpose.msra.mxu1 %v2195_v13  ;;  %v2295_v13 = vld [vmem:[%s3581_s1 + $0x1f4] ss:$8 sps:$4 sm:$0xff]  }
  0x45   : > { %806 = vmatprep.subr.bf16.mxu0 %v2196_v14  ;;  %2109 = vmatprep.subr.bf16.mxu1 %v2196_v14  ;;  %v2291_v14 = vld [vmem:[%s3581_s1 + $0xf0] ss:$8 sps:$4 sm:$0xff]  }
  0x4c   : > { %807 = vmatpush1.bf16.xpose.msra.mxu0 %v2198_v15  ;;  %2117 = vmatpush1.bf16.xpose.msra.mxu1 %v2198_v15  ;;  %v2297_v15 = vld [vmem:[%s3581_s1 + $0x1f0] ss:$8 sps:$4 sm:$0xff]  }
  0x4d   : > { %808 = vmatprep.subr.bf16.mxu0 %v2199_v16  ;;  %2110 = vmatprep.subr.bf16.mxu1 %v2199_v16 }
  0x54   : > { %809 = vmatpush1.bf16.xpose.msra.mxu0 %v2201_v17  ;;  %2118 = vmatpush1.bf16.xpose.msra.mxu1 %v2201_v17 }
  0x5b   : > { %827 = vmatmul.mubr.bf16.vlgmr.msra.gmra.mxu0 %v2202_v18  ;;  %955 = vmatmul.mubr.bf16.vlgmr.msra.gmra.mxu1 %v2208_v19 }
  0x5c   : > { %834 = vmatprep.mubr.bf16.mxu0 %v2205_v20  ;;  %962 = vmatprep.mubr.bf16.mxu1 %v2214_v21 }
  0x63   : > { %835 = vmatmul.mubr.bf16.gmra.mxu0 %v2207_v22  ;;  %963 = vmatmul.mubr.bf16.gmra.mxu1 %v2216_v23 }
  0x64   : > { %842 = vmatprep.mubr.bf16.mxu0 %v2211_v24  ;;  %970 = vmatprep.mubr.bf16.mxu1 %v2220_v25 }
  0x6b   : > { %843 = vmatmul.mubr.bf16.gmra.mxu0 %v2213_v26  ;;  %971 = vmatmul.mubr.bf16.gmra.mxu1 %v2222_v27 }
  0x6c   : > { %850 = vmatprep.mubr.bf16.mxu0 %v2217_v28  ;;  %978 = vmatprep.mubr.bf16.mxu1 %v2226_v29  ;;  %v2513_v28 = vmov -inf  }
  0x6d   : > { %311 = vst [vmem:[#allocation2] sm:$0x1] %v2513_v28 }
  0x73   : > { %851 = vmatmul.mubr.bf16.gmra.mxu0 %v2219_v30  ;;  %979 = vmatmul.mubr.bf16.gmra.mxu1 %v2228_v31 }
  0x74   : > { %858 = vmatprep.mubr.bf16.mxu0 %v2223_v32  ;;  %986 = vmatprep.mubr.bf16.mxu1 %v2232_v33 }
  0x7b   : > { %859 = vmatmul.mubr.bf16.gmra.mxu0 %v2225_v34  ;;  %987 = vmatmul.mubr.bf16.gmra.mxu1 %v2234_v35 }
  0x7c   : > { %866 = vmatprep.mubr.bf16.mxu0 %v2229_v36  ;;  %994 = vmatprep.mubr.bf16.mxu1 %v2238_v37 }
  0x83   : > { %867 = vmatmul.mubr.bf16.gmra.mxu0 %v2231_v38  ;;  %995 = vmatmul.mubr.bf16.gmra.mxu1 %v2240_v39 }
  0x84   : > { %874 = vmatprep.mubr.bf16.mxu0 %v2235_v40  ;;  %1002 = vmatprep.mubr.bf16.mxu1 %v2244_v41 }
  0x8b   : > { %875 = vmatmul.mubr.bf16.gmra.mxu0 %v2237_v42  ;;  %1003 = vmatmul.mubr.bf16.gmra.mxu1 %v2246_v43 }
  0x8c   : > { %882 = vmatprep.mubr.bf16.mxu0 %v2241_v44  ;;  %1010 = vmatprep.mubr.bf16.mxu1 %v2250_v45 }
  0x93   : > { %883 = vmatmul.mubr.bf16.gmra.mxu0 %v2243_v46  ;;  %1011 = vmatmul.mubr.bf16.gmra.mxu1 %v2252_v47 }
  0x94   : > { %890 = vmatprep.mubr.bf16.mxu0 %v2247_v48  ;;  %1018 = vmatprep.mubr.bf16.mxu1 %v2256_v49  ;;  %v2514_v49 = vmov 0.0  }
  0x95   : > { %312 = vst [vmem:[#allocation3] sm:$0x1] %v2514_v49  ;;  %313 = vst [vmem:[#allocation4] sm:$0x1] %v2514_v49 }
  0x9b   : > { %891 = vmatmul.mubr.bf16.gmra.mxu0 %v2249_v50  ;;  %1019 = vmatmul.mubr.bf16.gmra.mxu1 %v2258_v51 }
  0x9c   : > { %898 = vmatprep.mubr.bf16.mxu0 %v2253_v52  ;;  %1026 = vmatprep.mubr.bf16.mxu1 %v2262_v53 }
  0xa3   : > { %899 = vmatmul.mubr.bf16.gmra.mxu0 %v2255_v54  ;;  %1027 = vmatmul.mubr.bf16.gmra.mxu1 %v2264_v55 }
  0xa4   : > { %906 = vmatprep.mubr.bf16.mxu0 %v2259_v56  ;;  %1034 = vmatprep.mubr.bf16.mxu1 %v2268_v57 }
  0xab   : > { %907 = vmatmul.mubr.bf16.gmra.mxu0 %v2261_v58  ;;  %1035 = vmatmul.mubr.bf16.gmra.mxu1 %v2270_v59 }
  0xac   : > { %914 = vmatprep.mubr.bf16.mxu0 %v2265_v60  ;;  %1042 = vmatprep.mubr.bf16.mxu1 %v2274_v61 }
  0xb3   : > { %915 = vmatmul.mubr.bf16.gmra.mxu0 %v2267_v62  ;;  %1043 = vmatmul.mubr.bf16.gmra.mxu1 %v2276_v63 }
  0xb4   : > { %922 = vmatprep.mubr.bf16.mxu0 %v2271_v0  ;;  %1050 = vmatprep.mubr.bf16.mxu1 %v2280_v1  ;;  %v1148_v0 = vlaneseq }
  0xbb   : > { %923 = vmatmul.mubr.bf16.gmra.mxu0 %v2273_v2  ;;  %1051 = vmatmul.mubr.bf16.gmra.mxu1 %v2282_v3 }
  0xbc   : > { %930 = vmatprep.mubr.bf16.mxu0 %v2277_v4  ;;  %1058 = vmatprep.mubr.bf16.mxu1 %v2286_v5  ;;  %v2925_v5 = vshrl.u32 %v1148_v0, 7 }
  0xc3   : > { %931 = vmatmul.mubr.bf16.gmra.mxu0 %v2279_v6  ;;  %1059 = vmatmul.mubr.bf16.gmra.mxu1 %v2288_v7 }
  0xc4   : > { %938 = vmatprep.mubr.bf16.mxu0 %v2283_v8  ;;  %1066 = vmatprep.mubr.bf16.mxu1 %v2292_v9 }
  0xcb   : > { %939 = vmatmul.mubr.bf16.gmra.mxu0 %v2285_v10  ;;  %1067 = vmatmul.mubr.bf16.gmra.mxu1 %v2294_v11 }
  0xcc   : > { %946 = vmatprep.mubr.bf16.mxu0 %v2289_v12  ;;  %1074 = vmatprep.mubr.bf16.mxu1 %v2295_v13  ;;  %v2943_v13 = vld [vmem:[%s2931_s6] ss:$0 sm:$0xff] }
  0xcd   : > { %vm1630_vm1 = vcmp.eq.s32.totalorder %v2925_v5, %v2943_v13 }
  0xd3   : > { %947 = vmatmul.mubr.bf16.gmra.mxu0 %v2291_v14  ;;  %1075 = vmatmul.mubr.bf16.gmra.mxu1 %v2297_v15  ;;  %v1150_v14 = vadd.s32 8, %v2925_v5 }
  0xd5   : > { %vm1631_vm0 = vcmp.eq.s32.totalorder %v1150_v14, %v2943_v13  ;;  %v1157_v14 = vadd.s32 64, %v2925_v5 }
  0xd7   : > { %vm1638_vm8 = vcmp.eq.s32.totalorder %v1157_v14, %v2943_v13 }
 0x11b   : > { %v2819_v16 = vpop.f32.mrf.mxu0  ;;  %v2821_v17 = vpop.f32.mrf.mxu1 }
 0x11c   : > { %1083 = vst [vmem:[%s2823_s26] sm:$0xff] %v2819_v16  ;;  %1115 = vst [vmem:[%s2823_s26 + $0x100] sm:$0xff] %v2821_v17 }
 0x11d   : > { %v830_v18 = vpop.f32.mrf.mxu0  ;;  %v958_v19 = vpop.f32.mrf.mxu1 }
 0x11e   : > { %v1151_v19 = vadd.s32 16, %v2925_v5 }
 0x11f   : > { %v2829_v20 = vpop.f32.mrf.mxu0  ;;  %v2831_v21 = vpop.f32.mrf.mxu1 }
 0x120   : > { %1084 = vst [vmem:[%s2823_s26 + $0x8] sm:$0xff] %v2829_v20  ;;  %1116 = vst [vmem:[%s2823_s26 + $0x108] sm:$0xff] %v2831_v21  ;;  %vm1632_vm2 = vcmp.eq.s32.totalorder %v1151_v19, %v2943_v13 }
 0x121   : > { %v833_v22 = vpop.f32.mrf.mxu0  ;;  %v961_v23 = vpop.f32.mrf.mxu1 }
 0x123   : > { %v2837_v24 = vpop.f32.mrf.mxu0  ;;  %v2839_v25 = vpop.f32.mrf.mxu1 }
 0x124   : > { %1085 = vst [vmem:[%s2823_s26 + $0x10] sm:$0xff] %v2837_v24  ;;  %1117 = vst [vmem:[%s2823_s26 + $0x110] sm:$0xff] %v2839_v25  ;;  %v1696_v49 = vsel %vm1632_vm2, %v2837_v24, 0.0 }
 0x125   : > { %v838_v26 = vpop.f32.mrf.mxu0  ;;  %v966_v27 = vpop.f32.mrf.mxu1 }
 0x126   : > { %v1307_v26 = vmax.f32 %v2831_v21, %v2821_v17  ;;  %v1152_v27 = vadd.s32 24, %v2925_v5 }
 0x127   : > { %v2845_v29 = vpop.f32.mrf.mxu0  ;;  %v2847_v30 = vpop.f32.mrf.mxu1 }
 0x128   : > { %3612 = vst [vmem:[#allocation8_spill] sm:$0xff] %v2845_v29  ;;  %1086 = vst [vmem:[%s2823_s26 + $0x18] sm:$0xff] %v2845_v29  ;;  %vm1633_vm3 = vcmp.eq.s32.totalorder %v1152_v27, %v2943_v13 }
 0x129   : > { %1118 = vst [vmem:[%s2823_s26 + $0x118] sm:$0xff] %v2847_v30  ;;  %v841_v31 = vpop.f32.mrf.mxu0  ;;  %v969_v32 = vpop.f32.mrf.mxu1 }
 0x12a   : > { %v1153_v32 = vadd.s32 32, %v2925_v5 }
 0x12b   : > { %v2853_v33 = vpop.f32.mrf.mxu0  ;;  %v2855_v34 = vpop.f32.mrf.mxu1 }
 0x12c   : > { %3613 = vst [vmem:[#allocation9_spill] sm:$0xff] %v2853_v33  ;;  %1087 = vst [vmem:[%s2823_s26 + $0x20] sm:$0xff] %v2853_v33  ;;  %vm1634_vm4 = vcmp.eq.s32.totalorder %v1153_v32, %v2943_v13  ;;  %v1158_v32 = vadd.s32 72, %v2925_v5 }
 0x12d   : > { %1119 = vst [vmem:[%s2823_s26 + $0x120] sm:$0xff] %v2855_v34  ;;  %v846_v35 = vpop.f32.mrf.mxu0  ;;  %v974_v36 = vpop.f32.mrf.mxu1 }
 0x12e   : > { %vm1639_vm9 = vcmp.eq.s32.totalorder %v1158_v32, %v2943_v13 }
 0x12f   : > { %v2861_v37 = vpop.f32.mrf.mxu0  ;;  %v2863_v38 = vpop.f32.mrf.mxu1 }
 0x130   : > { %1088 = vst [vmem:[%s2823_s26 + $0x28] sm:$0xff] %v2861_v37  ;;  %1120 = vst [vmem:[%s2823_s26 + $0x128] sm:$0xff] %v2863_v38 }
 0x131   : > { %v849_v39 = vpop.f32.mrf.mxu0  ;;  %v977_v40 = vpop.f32.mrf.mxu1 }
 0x132   : > { %v1695_v39 = vsel %vm1631_vm0, %v2829_v20, 0.0  ;;  %v1311_v40 = vmax.f32 %v1307_v26, %v2839_v25 }
 0x133   : > { %v2869_v41 = vpop.f32.mrf.mxu0  ;;  %v2871_v42 = vpop.f32.mrf.mxu1 }
 0x134   : > { %1089 = vst [vmem:[%s2823_s26 + $0x30] sm:$0xff] %v2869_v41  ;;  %1121 = vst [vmem:[%s2823_s26 + $0x130] sm:$0xff] %v2871_v42 }
 0x135   : > { %v854_v43 = vpop.f32.mrf.mxu0  ;;  %v982_v44 = vpop.f32.mrf.mxu1 }
 0x136   : > { %v1154_v43 = vadd.s32 40, %v2925_v5 }
 0x137   : > { %v2877_v45 = vpop.f32.mrf.mxu0  ;;  %v2879_v46 = vpop.f32.mrf.mxu1 }
 0x138   : > { %3614 = vst [vmem:[#allocation10_spill] sm:$0xff] %v2877_v45  ;;  %1090 = vst [vmem:[%s2823_s26 + $0x38] sm:$0xff] %v2877_v45  ;;  %vm1635_vm5 = vcmp.eq.s32.totalorder %v1154_v43, %v2943_v13 }
 0x139   : > { %1122 = vst [vmem:[%s2823_s26 + $0x138] sm:$0xff] %v2879_v46  ;;  %v857_v47 = vpop.f32.mrf.mxu0  ;;  %v985_v48 = vpop.f32.mrf.mxu1 }
 0x13a   : > { %v1694_v48 = vsel %vm1630_vm1, %v2819_v16, 0.0 }
 0x13b   : > { %v2885_v50 = vpop.f32.mrf.mxu0  ;;  %v2887_v51 = vpop.f32.mrf.mxu1 }
 0x13c   : > { %1091 = vst [vmem:[%s2823_s26 + $0x40] sm:$0xff] %v2885_v50  ;;  %1123 = vst [vmem:[%s2823_s26 + $0x140] sm:$0xff] %v2887_v51 }
 0x13d   : > { %v862_v52 = vpop.f32.mrf.mxu0  ;;  %v990_v53 = vpop.f32.mrf.mxu1 }
 0x13e   : > { %v1758_v52 = vadd.f32 %v1695_v39, %v1694_v48  ;;  %v1155_v53 = vadd.s32 48, %v2925_v5  ;;  %v1159_v48 = vadd.s32 80, %v2925_v5 }
 0x13f   : > { %v2893_v54 = vpop.f32.mrf.mxu0  ;;  %v2895_v55 = vpop.f32.mrf.mxu1 }
 0x140   : > { %3615 = vst [vmem:[#allocation11_spill] sm:$0xff] %v2893_v54  ;;  %1092 = vst [vmem:[%s2823_s26 + $0x48] sm:$0xff] %v2893_v54  ;;  %v1759_v0 = vadd.f32 %v1758_v52, %v1696_v49  ;;  %vm1636_vm6 = vcmp.eq.s32.totalorder %v1155_v53, %v2943_v13  ;;  %vm1640_vm10 = vcmp.eq.s32.totalorder %v1159_v48, %v2943_v13 }
 0x141   : > { %1124 = vst [vmem:[%s2823_s26 + $0x148] sm:$0xff] %v2895_v55  ;;  %v865_v56 = vpop.f32.mrf.mxu0  ;;  %v993_v57 = vpop.f32.mrf.mxu1  ;;  %v1700_v39 = vsel %vm1636_vm6, %v2869_v41, 0.0 }
 0x143   : > { %v2901_v58 = vpop.f32.mrf.mxu0  ;;  %v2903_v59 = vpop.f32.mrf.mxu1 }
 0x144   : > { %1093 = vst [vmem:[%s2823_s26 + $0x50] sm:$0xff] %v2901_v58  ;;  %1125 = vst [vmem:[%s2823_s26 + $0x150] sm:$0xff] %v2903_v59 }
 0x145   : > { %v870_v60 = vpop.f32.mrf.mxu0  ;;  %v998_v61 = vpop.f32.mrf.mxu1 }
 0x146   : > { %v1697_v60 = vsel %vm1633_vm3, %v2845_v29, 0.0  ;;  %v1315_v61 = vmax.f32 %v1311_v40, %v2847_v30 }
 0x147   : > { %v2909_v62 = vpop.f32.mrf.mxu0  ;;  %v2911_v63 = vpop.f32.mrf.mxu1 }
 0x148   : > { %3616 = vst [vmem:[#allocation12_spill] sm:$0xff] %v2909_v62  ;;  %1094 = vst [vmem:[%s2823_s26 + $0x58] sm:$0xff] %v2909_v62 }
 0x149   : > { %1126 = vst [vmem:[%s2823_s26 + $0x158] sm:$0xff] %v2911_v63  ;;  %v873_v1 = vpop.f32.mrf.mxu0  ;;  %v1001_v2 = vpop.f32.mrf.mxu1 }
 0x14a   : > { %v1156_v1 = vadd.s32 56, %v2925_v5 }
 0x14b   : > { %v2917_v3 = vpop.f32.mrf.mxu0  ;;  %v2919_v4 = vpop.f32.mrf.mxu1 }
 0x14c   : > { %3617 = vst [vmem:[#allocation13_spill] sm:$0xff] %v2917_v3  ;;  %1095 = vst [vmem:[%s2823_s26 + $0x60] sm:$0xff] %v2917_v3  ;;  %vm1637_vm7 = vcmp.eq.s32.totalorder %v1156_v1, %v2943_v13  ;;  %v1702_v1 = vsel %vm1638_vm8, %v2885_v50, 0.0 }
 0x14d   : > { %1127 = vst [vmem:[%s2823_s26 + $0x160] sm:$0xff] %v2919_v4  ;;  %v878_v6 = vpop.f32.mrf.mxu0  ;;  %v1006_v7 = vpop.f32.mrf.mxu1  ;;  %v1701_v53 = vsel %vm1637_vm7, %v2877_v45, 0.0 }
 0x14e   : > { %v1698_v7 = vsel %vm1634_vm4, %v2853_v33, 0.0 }
 0x14f   : > { %v2933_v8 = vpop.f32.mrf.mxu0  ;;  %v2935_v9 = vpop.f32.mrf.mxu1 }
 0x150   : > { %1096 = vst [vmem:[%s2823_s26 + $0x68] sm:$0xff] %v2933_v8  ;;  %1128 = vst [vmem:[%s2823_s26 + $0x168] sm:$0xff] %v2935_v9 }
 0x151   : > { %v881_v11 = vpop.f32.mrf.mxu0  ;;  %v1009_v12 = vpop.f32.mrf.mxu1 }
 0x152   : > { %v1308_v11 = vmax.f32 %v2855_v34, %v1315_v61  ;;  %v1760_v12 = vadd.f32 %v1759_v0, %v1697_v60  ;;  %v1160_v60 = vadd.s32 88, %v2925_v5 }
 0x153   : > { %v2946_v15 = vpop.f32.mrf.mxu0  ;;  %v2948_v18 = vpop.f32.mrf.mxu1 }
 0x154   : > { %1097 = vst [vmem:[%s2823_s26 + $0x70] sm:$0xff] %v2946_v15  ;;  %1129 = vst [vmem:[%s2823_s26 + $0x170] sm:$0xff] %v2948_v18  ;;  %v1312_v26 = vmax.f32 %v1308_v11, %v2863_v38  ;;  %v1761_v27 = vadd.f32 %v1760_v12, %v1698_v7  ;;  %v1161_v12 = vadd.s32 96, %v2925_v5  ;;  %vm1641_vm11 = vcmp.eq.s32.totalorder %v1160_v60, %v2943_v13 }
 0x155   : > { %v886_v22 = vpop.f32.mrf.mxu0  ;;  %v1014_v23 = vpop.f32.mrf.mxu1 }
 0x156   : > { %v1699_v23 = vsel %vm1635_vm5, %v2861_v37, 0.0  ;;  %v1316_v40 = vmax.f32 %v1312_v26, %v2871_v42  ;;  %vm1642_vm12 = vcmp.eq.s32.totalorder %v1161_v12, %v2943_v13 }
 0x157   : > { %v2959_v28 = vpop.f32.mrf.mxu0  ;;  %v2961_v31 = vpop.f32.mrf.mxu1  ;;  %v1762_v43 = vadd.f32 %v1761_v27, %v1699_v23  ;;  %v1162_v27 = vadd.s32 104, %v2925_v5 }
 0x158   : > { %3618 = vst [vmem:[#allocation14_spill] sm:$0xff] %v2959_v28  ;;  %3619 = vst [vmem:[#allocation15_spill] sm:$0xff] %v2961_v31 }
 0x159   : > { %1098 = vst [vmem:[%s2823_s26 + $0x78] sm:$0xff] %v2959_v28  ;;  %1130 = vst [vmem:[%s2823_s26 + $0x178] sm:$0xff] %v2961_v31  ;;  %v889_v35 = vpop.f32.mrf.mxu0  ;;  %v1017_v36 = vpop.f32.mrf.mxu1  ;;  %vm1643_vm13 = vcmp.eq.s32.totalorder %v1162_v27, %v2943_v13 }
 0x15a   : > { %v1707_v27 = vsel %vm1643_vm13, %v2933_v8, 0.0 }
 0x15b   : > { %v2975_v44 = vpop.f32.mrf.mxu0  ;;  %v2977_v47 = vpop.f32.mrf.mxu1 }
 0x15c   : > { %3620 = vst [vmem:[#allocation16_spill] sm:$0xff] %v2977_v47  ;;  %1099 = vst [vmem:[%s2823_s26 + $0x80] sm:$0xff] %v2975_v44 }
 0x15d   : > { %1131 = vst [vmem:[%s2823_s26 + $0x180] sm:$0xff] %v2977_v47  ;;  %v894_v56 = vpop.f32.mrf.mxu0  ;;  %v1022_v57 = vpop.f32.mrf.mxu1 }
 0x15e   : > { %v1309_v56 = vmax.f32 %v2879_v46, %v1316_v40  ;;  %v1763_v57 = vadd.f32 %v1762_v43, %v1700_v39  ;;  %v1704_v40 = vsel %vm1640_vm10, %v2901_v58, 0.0 }
 0x15f   : > { %v2991_v2 = vpop.f32.mrf.mxu0  ;;  %v2993_v6 = vpop.f32.mrf.mxu1 }
 0x160   : > { %1100 = vst [vmem:[%s2823_s26 + $0x88] sm:$0xff] %v2991_v2  ;;  %1132 = vst [vmem:[%s2823_s26 + $0x188] sm:$0xff] %v2993_v6  ;;  %v1313_v7 = vmax.f32 %v1309_v56, %v2887_v51  ;;  %v1764_v11 = vadd.f32 %v1763_v57, %v1701_v53  ;;  %v1705_v56 = vsel %vm1641_vm11, %v2909_v62, 0.0 }
 0x161   : > { %v897_v19 = vpop.f32.mrf.mxu0  ;;  %v1025_v22 = vpop.f32.mrf.mxu1 }
 0x162   : > { %v1703_v22 = vsel %vm1639_vm9, %v2893_v54, 0.0  ;;  %v1317_v23 = vmax.f32 %v1313_v7, %v2895_v55  ;;  %v1765_v26 = vadd.f32 %v1764_v11, %v1702_v1  ;;  %v1164_v1 = vadd.s32 120, %v2925_v5 }
 0x163   : > { %v3007_v35 = vpop.f32.mrf.mxu0  ;;  %v3009_v36 = vpop.f32.mrf.mxu1 }
 0x164   : > { %3621 = vst [vmem:[#allocation17_spill] sm:$0xff] %v3009_v36  ;;  %1101 = vst [vmem:[%s2823_s26 + $0x90] sm:$0xff] %v3007_v35  ;;  %v1319_v43 = vmax.f32 %v2903_v59, %v1317_v23  ;;  %v1766_v48 = vadd.f32 %v1765_v26, %v1703_v22  ;;  %v1165_v22 = vadd.s32 128, %v2925_v5  ;;  %vm1645_vm15 = vcmp.eq.s32.totalorder %v1164_v1, %v2943_v13 }
 0x165   : > { %1133 = vst [vmem:[%s2823_s26 + $0x190] sm:$0xff] %v3009_v36  ;;  %v902_v49 = vpop.f32.mrf.mxu0  ;;  %v1030_v52 = vpop.f32.mrf.mxu1 }
 0x166   : > { %v1163_v49 = vadd.s32 112, %v2925_v5  ;;  %v1323_v57 = vmax.f32 %v1319_v43, %v2911_v63  ;;  %v1767_v60 = vadd.f32 %v1766_v48, %v1704_v40  ;;  %v1166_v48 = vadd.s32 136, %v2925_v5 }
 0x167   : > { %v3023_v61 = vpop.f32.mrf.mxu0  ;;  %v3025_v0 = vpop.f32.mrf.mxu1  ;;  %vm1646_vm0 = vcmp.eq.s32.totalorder %v1165_v22, %v2943_v13 }
 0x168   : > { %3622 = vst [vmem:[#allocation18_spill] sm:$0xff] %v3023_v61  ;;  %3623 = vst [vmem:[#allocation19_spill] sm:$0xff] %v3025_v0  ;;  %v1327_v12 = vmax.f32 %v1323_v57, %v2919_v4  ;;  %vm1644_vm14 = vcmp.eq.s32.totalorder %v1163_v49, %v2943_v13  ;;  %vm1647_vm1 = vcmp.eq.s32.totalorder %v1166_v48, %v2943_v13  ;;  %v1169_v48 = vadd.s32 160, %v2925_v5 }
 0x169   : > { %1102 = vst [vmem:[%s2823_s26 + $0x98] sm:$0xff] %v3023_v61  ;;  %1134 = vst [vmem:[%s2823_s26 + $0x198] sm:$0xff] %v3025_v0  ;;  %v905_v14 = vpop.f32.mrf.mxu0  ;;  %v1033_v19 = vpop.f32.mrf.mxu1 }
 0x16a   : > { %v1706_v14 = vsel %vm1642_vm12, %v2917_v3, 0.0  ;;  %v1768_v19 = vadd.f32 %v1767_v60, %v1705_v56  ;;  %v1331_v40 = vmax.f32 %v1327_v12, %v2935_v9  ;;  %v1708_v56 = vsel %vm1644_vm14, %v2946_v15, 0.0 }
 0x16b   : > { %v3039_v32 = vpop.f32.mrf.mxu0  ;;  %v3041_v39 = vpop.f32.mrf.mxu1  ;;  %v1167_v60 = vadd.s32 144, %v2925_v5  ;;  %v1709_v12 = vsel %vm1645_vm15, %v2959_v28, 0.0  ;;  %vm1650_vm4 = vcmp.eq.s32.totalorder %v1169_v48, %v2943_v13  ;;  %v1173_v48 = vadd.s32 192, %v2925_v5 }
 0x16c   : > { %3624 = vst [vmem:[#allocation20_spill] sm:$0xff] %v3039_v32  ;;  %1103 = vst [vmem:[%s2823_s26 + $0xa0] sm:$0xff] %v3039_v32  ;;  %v1769_v43 = vadd.f32 %v1768_v19, %v1706_v14  ;;  %v1335_v49 = vmax.f32 %v1331_v40, %v2948_v18 }
 0x16d   : > { %1135 = vst [vmem:[%s2823_s26 + $0x1a0] sm:$0xff] %v3041_v39  ;;  %v910_v52 = vpop.f32.mrf.mxu0  ;;  %v1038_v53 = vpop.f32.mrf.mxu1  ;;  %vm1648_vm2 = vcmp.eq.s32.totalorder %v1167_v60, %v2943_v13  ;;  %vm1654_vm8 = vcmp.eq.s32.totalorder %v1173_v48, %v2943_v13 }
 0x16e   : > { %v1770_v57 = vadd.f32 %v1769_v43, %v1707_v27  ;;  %v1306_v19 = vmax.f32 %v2961_v31, %v1335_v49  ;;  %v1710_v27 = vsel %vm1646_vm0, %v2975_v44, 0.0 }
 0x16f   : > { %v3055_v7 = vpop.f32.mrf.mxu0  ;;  %v3057_v11 = vpop.f32.mrf.mxu1 }
 0x170   : > { %3625 = vst [vmem:[#allocation21_spill] sm:$0xff] %v3055_v7  ;;  %1104 = vst [vmem:[%s2823_s26 + $0xa8] sm:$0xff] %v3055_v7  ;;  %v1310_v22 = vmax.f32 %v1306_v19, %v2977_v47  ;;  %v1170_v19 = vadd.s32 168, %v2925_v5 }
 0x171   : > { %1136 = vst [vmem:[%s2823_s26 + $0x1a8] sm:$0xff] %v3057_v11  ;;  %v913_v23 = vpop.f32.mrf.mxu0  ;;  %v1041_v26 = vpop.f32.mrf.mxu1 }
 0x172   : > { %v1771_v23 = vadd.f32 %v1770_v57, %v1708_v56  ;;  %v1168_v26 = vadd.s32 152, %v2925_v5  ;;  %v1711_v57 = vsel %vm1647_vm1, %v2991_v2, 0.0  ;;  %vm1651_vm5 = vcmp.eq.s32.totalorder %v1170_v19, %v2943_v13 }
 0x173   : > { %v3071_v52 = vpop.f32.mrf.mxu0  ;;  %v3073_v53 = vpop.f32.mrf.mxu1 }
 0x174   : > { %3626 = vst [vmem:[#allocation22_spill] sm:$0xff] %v3073_v53  ;;  %1105 = vst [vmem:[%s2823_s26 + $0xb0] sm:$0xff] %v3071_v52  ;;  %v1772_v43 = vadd.f32 %v1771_v23, %v1709_v12  ;;  %vm1649_vm3 = vcmp.eq.s32.totalorder %v1168_v26, %v2943_v13  ;;  %v1712_v12 = vsel %vm1648_vm2, %v3007_v35, 0.0 }
 0x175   : > { %1137 = vst [vmem:[%s2823_s26 + $0x1b0] sm:$0xff] %v3073_v53  ;;  %v918_v1 = vpop.f32.mrf.mxu0  ;;  %v1046_v14 = vpop.f32.mrf.mxu1 }
 0x176   : > { %v1314_v1 = vmax.f32 %v1310_v22, %v2993_v6  ;;  %v1773_v14 = vadd.f32 %v1772_v43, %v1710_v27  ;;  %v1171_v27 = vadd.s32 176, %v2925_v5  ;;  %v1282_v43 = vmax.f32 %v2845_v29, %v2877_v45 }
 0x177   : > { %v3087_v40 = vpop.f32.mrf.mxu0  ;;  %v3089_v10 = vpop.f32.mrf.mxu1  ;;  %v1714_v45 = vsel %vm1650_vm4, %v3039_v32, 0.0 }
 0x178   : > { %3627 = vst [vmem:[#allocation23_spill] sm:$0xff] %v3087_v40  ;;  %3628 = vst [vmem:[#allocation24_spill] sm:$0xff] %v3089_v10  ;;  %v1318_v60 = vmax.f32 %v1314_v1, %v3009_v36  ;;  %v1774_v23 = vadd.f32 %v1773_v14, %v1711_v57  ;;  %v1172_v57 = vadd.s32 184, %v2925_v5  ;;  %vm1652_vm6 = vcmp.eq.s32.totalorder %v1171_v27, %v2943_v13 }
 0x179   : > { %1106 = vst [vmem:[%s2823_s26 + $0xb8] sm:$0xff] %v3087_v40  ;;  %1138 = vst [vmem:[%s2823_s26 + $0x1b8] sm:$0xff] %v3089_v10  ;;  %v921_v56 = vpop.f32.mrf.mxu0  ;;  %v1049_v49 = vpop.f32.mrf.mxu1  ;;  %v1716_v19 = vsel %vm1652_vm6, %v3071_v52, 0.0 }
 0x17a   : > { %v1713_v56 = vsel %vm1649_vm3, %v3023_v61, 0.0  ;;  %v1320_v49 = vmax.f32 %v3025_v0, %v1318_v60  ;;  %v1775_v1 = vadd.f32 %v1774_v23, %v1712_v12  ;;  %v1174_v23 = vadd.s32 200, %v2925_v5 }
 0x17b   : > { %v3103_v47 = vpop.f32.mrf.mxu0  ;;  %v3105_v31 = vpop.f32.mrf.mxu1  ;;  %vm1653_vm7 = vcmp.eq.s32.totalorder %v1172_v57, %v2943_v13 }
 0x17c   : > { %3629 = vst [vmem:[#allocation25_spill] sm:$0xff] %v3103_v47  ;;  %1107 = vst [vmem:[%s2823_s26 + $0xc0] sm:$0xff] %v3103_v47  ;;  %v1324_v60 = vmax.f32 %v1320_v49, %v3041_v39  ;;  %v1776_v12 = vadd.f32 %v1775_v1, %v1713_v56  ;;  %v1715_v49 = vsel %vm1651_vm5, %v3055_v7, 0.0  ;;  %v1280_v56 = vmax.f32 %v2829_v20, %v2861_v37 }
 0x17d   : > { %1139 = vst [vmem:[%s2823_s26 + $0x1c0] sm:$0xff] %v3105_v31  ;;  %v926_v26 = vpop.f32.mrf.mxu0  ;;  %v1054_v22 = vpop.f32.mrf.mxu1  ;;  %vm1655_vm9 = vcmp.eq.s32.totalorder %v1174_v23, %v2943_v13  ;;  %v1718_v57 = vsel %vm1654_vm8, %v3103_v47, 0.0 }
 0x17e   : > { %v1279_v26 = vmax.f32 %v2819_v16, %v2853_v33  ;;  %v1286_v22 = vmax.f32 %v1282_v43, %v2909_v62  ;;  %v1328_v62 = vmax.f32 %v1324_v60, %v3057_v11  ;;  %v1777_v1 = vadd.f32 %v1776_v12, %v1714_v45 }
 0x17f   : > { %v3122_v14 = vpop.f32.mrf.mxu0  ;;  %v3124_v36 = vpop.f32.mrf.mxu1  ;;  %v1284_v45 = vmax.f32 %v1280_v56, %v2893_v54 }
 0x180   : > { %1108 = vst [vmem:[%s2823_s26 + $0xc8] sm:$0xff] %v3122_v14  ;;  %1140 = vst [vmem:[%s2823_s26 + $0x1c8] sm:$0xff] %v3124_v36  ;;  %v1283_v33 = vmax.f32 %v1279_v26, %v2885_v50  ;;  %v1290_v43 = vmax.f32 %v1286_v22, %v2959_v28  ;;  %v1332_v60 = vmax.f32 %v1328_v62, %v3073_v53  ;;  %v1175_v28 = vadd.s32 208, %v2925_v5 }
 0x181   : > { %v929_v29 = vpop.f32.mrf.mxu0  ;;  %v1057_v0 = vpop.f32.mrf.mxu1  ;;  %v1778_v12 = vadd.f32 %v1777_v1, %v1715_v49  ;;  %v1717_v62 = vsel %vm1653_vm7, %v3087_v40, 0.0  ;;  %v1281_v49 = vmax.f32 %v2837_v24, %v2869_v41  ;;  %v1288_v56 = vmax.f32 %v1284_v45, %v2933_v8 }
 0x182   : > { %v1287_v26 = vmax.f32 %v1283_v33, %v2917_v3  ;;  %v1294_v22 = vmax.f32 %v1290_v43, %v3023_v61  ;;  %v1336_v3 = vmax.f32 %v1332_v60, %v3089_v10  ;;  %vm1656_vm10 = vcmp.eq.s32.totalorder %v1175_v28, %v2943_v13 }
 0x183   : > { %v3147_v29 = vpop.f32.mrf.mxu0  ;;  %v3149_v0 = vpop.f32.mrf.mxu1  ;;  %v1779_v1 = vadd.f32 %v1778_v12, %v1716_v19  ;;  %v1285_v19 = vmax.f32 %v1281_v49, %v2901_v58  ;;  %v1292_v48 = vmax.f32 %v1288_v56, %v2991_v2 }
 0x184   : > { %1109 = vst [vmem:[%s2823_s26 + $0xd0] sm:$0xff] %v3147_v29  ;;  %1141 = vst [vmem:[%s2823_s26 + $0x1d0] sm:$0xff] %v3149_v0  ;;  %v1291_v27 = vmax.f32 %v1287_v26, %v2975_v44  ;;  %v1298_v61 = vmax.f32 %v1294_v22, %v3087_v40  ;;  %v1339_v22 = vmax.f32 %v3105_v31, %v1336_v3 }
 0x185   : > { %v934_v33 = vpop.f32.mrf.mxu0  ;;  %v1062_v43 = vpop.f32.mrf.mxu1  ;;  %v1780_v45 = vadd.f32 %v1779_v1, %v1717_v62  ;;  %v1289_v49 = vmax.f32 %v1285_v19, %v2946_v15  ;;  %v1178_v1 = vadd.s32 232, %v2925_v5  ;;  %v1296_v56 = vmax.f32 %v1292_v48, %v3055_v7 }
 0x186   : > { %v1176_v33 = vadd.s32 216, %v2925_v5  ;;  %v1295_v26 = vmax.f32 %v1291_v27, %v3039_v32  ;;  %v1177_v27 = vadd.s32 224, %v2925_v5 }
 0x187   : > { %v3173_v54 = vpop.f32.mrf.mxu0  ;;  %v3176_v43 = vpop.f32.mrf.mxu1  ;;  %v1781_v62 = vadd.f32 %v1780_v45, %v1718_v57  ;;  %v1293_v45 = vmax.f32 %v1289_v49, %v3007_v35  ;;  %v1300_v48 = vmax.f32 %v1296_v56, %v3122_v14  ;;  %vm1659_vm13 = vcmp.eq.s32.totalorder %v1178_v1, %v2943_v13 }
 0x188   : > { %1110 = vst [vmem:[%s2823_s26 + $0xd8] sm:$0xff] %v3173_v54  ;;  %v1302_v60 = vmax.f32 %v1298_v61, %v3173_v54  ;;  %1142 = vst [vmem:[%s2823_s26 + $0x1d8] sm:$0xff] %v3176_v43  ;;  %v1299_v3 = vmax.f32 %v1295_v26, %v3103_v47  ;;  %v1719_v61 = vsel %vm1655_vm9, %v3122_v14, 0.0  ;;  %vm1657_vm11 = vcmp.eq.s32.totalorder %v1176_v33, %v2943_v13 }
 0x189   : > { %v937_v12 = vpop.f32.mrf.mxu0  ;;  %v1065_v40 = vpop.f32.mrf.mxu1  ;;  %v1720_v26 = vsel %vm1656_vm10, %v3147_v29, 0.0  ;;  %v1782_v57 = vadd.f32 %v1781_v62, %v1719_v61  ;;  %vm1658_vm12 = vcmp.eq.s32.totalorder %v1177_v27, %v2943_v13  ;;  %v1297_v61 = vmax.f32 %v1293_v45, %v3071_v52 }
 0x18a   : > { %v1321_v32 = vmax.f32 %v1302_v60, %v1339_v22  ;;  %v1179_v60 = vadd.s32 240, %v2925_v5  ;;  %v1180_v1 = vadd.s32 248, %v2925_v5 }
 0x18b   : > { %v3198_v28 = vpop.f32.mrf.mxu0  ;;  %v3201_v40 = vpop.f32.mrf.mxu1  ;;  %v1783_v47 = vadd.f32 %v1782_v57, %v1720_v26 }
 0x18c   : > { %v1325_v12 = vmax.f32 %v1321_v32, %v3124_v36  ;;  %1111 = vst [vmem:[%s2823_s26 + $0xe0] sm:$0xff] %v3198_v28  ;;  %v1303_v23 = vmax.f32 %v1299_v3, %v3198_v28  ;;  %1143 = vst [vmem:[%s2823_s26 + $0x1e0] sm:$0xff] %v3201_v40  ;;  %v1721_v32 = vsel %vm1657_vm11, %v3173_v54, 0.0  ;;  %v1722_v62 = vsel %vm1658_vm12, %v3198_v28, 0.0 }
 0x18d   : > { %v942_v22 = vpop.f32.mrf.mxu0  ;;  %v1070_v19 = vpop.f32.mrf.mxu1  ;;  %v1784_v56 = vadd.f32 %v1783_v47, %v1721_v32  ;;  %vm1660_vm14 = vcmp.eq.s32.totalorder %v1179_v60, %v2943_v13  ;;  %vm1661_vm15 = vcmp.eq.s32.totalorder %v1180_v1, %v2943_v13  ;;  %v1184_v1 = vadd.s32 280, %v2925_v5 }
 0x18e   : > { %v1329_v3 = vmax.f32 %v1325_v12, %v1303_v23  ;;  %v1301_v23 = vmax.f32 %v1297_v61, %v3147_v29  ;;  %v1181_v19 = vadd.s32 256, %v2925_v5  ;;  %v1182_v61 = vadd.s32 264, %v2925_v5 }
 0x18f   : > { %v3218_v7 = vpop.f32.mrf.mxu0  ;;  %v3221_v27 = vpop.f32.mrf.mxu1  ;;  %v1785_v45 = vadd.f32 %v1784_v56, %v1722_v62  ;;  %vm1665_vm3 = vcmp.eq.s32.totalorder %v1184_v1, %v2943_v13  ;;  %v1188_v1 = vadd.s32 312, %v2925_v5 }
 0x190   : > { %v1333_v49 = vmax.f32 %v1329_v3, %v3149_v0  ;;  %1112 = vst [vmem:[%s2823_s26 + $0xe8] sm:$0xff] %v3218_v7  ;;  %v1304_v33 = vmax.f32 %v1300_v48, %v3218_v7  ;;  %1144 = vst [vmem:[%s2823_s26 + $0x1e8] sm:$0xff] %v3221_v27  ;;  %v1723_v22 = vsel %vm1659_vm13, %v3218_v7, 0.0  ;;  %vm1662_vm0 = vcmp.eq.s32.totalorder %v1181_v19, %v2943_v13 }
 0x191   : > { %v945_v26 = vpop.f32.mrf.mxu0  ;;  %v1073_v12 = vpop.f32.mrf.mxu1  ;;  %vm1663_vm1 = vcmp.eq.s32.totalorder %v1182_v61, %v2943_v13  ;;  %v1186_v61 = vadd.s32 296, %v2925_v5  ;;  %vm1669_vm7 = vcmp.eq.s32.totalorder %v1188_v1, %v2943_v13 }
 0x192   : > { %v1337_v57 = vmax.f32 %v1333_v49, %v1304_v33  ;;  %v1786_v49 = vadd.f32 %v1785_v45, %v1723_v22  ;;  %v1183_v26 = vadd.s32 272, %v2925_v5 }
 0x193   : > { %v3236_v3 = vpop.f32.mrf.mxu0  ;;  %v3238_v48 = vpop.f32.mrf.mxu1  ;;  %vm1667_vm5 = vcmp.eq.s32.totalorder %v1186_v61, %v2943_v13 }
 0x194   : > { %3630 = vst [vmem:[#allocation26_spill] sm:$0xff] %v3236_v3  ;;  %v1322_v47 = vmax.f32 %v3176_v43, %v1337_v57  ;;  %1113 = vst [vmem:[%s2823_s26 + $0xf0] sm:$0xff] %v3236_v3  ;;  %v1305_v60 = vmax.f32 %v1301_v23, %v3236_v3  ;;  %v1724_v32 = vsel %vm1660_vm14, %v3236_v3, 0.0  ;;  %vm1664_vm2 = vcmp.eq.s32.totalorder %v1183_v26, %v2943_v13 }
 0x195   : > { %1145 = vst [vmem:[%s2823_s26 + $0x1f0] sm:$0xff] %v3238_v48  ;;  %v950_v62 = vpop.f32.mrf.mxu0  ;;  %v1078_v33 = vpop.f32.mrf.mxu1  ;;  %v1787_v12 = vadd.f32 %v1786_v49, %v1724_v32  ;;  %v1185_v49 = vadd.s32 288, %v2925_v5 }
 0x196   : > { %v1326_v56 = vmax.f32 %v1322_v47, %v1305_v60  ;;  %v1726_v60 = vsel %vm1662_vm0, %v2821_v17, 0.0  ;;  %v1727_v33 = vsel %vm1663_vm1, %v2831_v21, 0.0 }
 0x197   : > { %v3251_v57 = vpop.f32.mrf.mxu0  ;;  %v3253_v23 = vpop.f32.mrf.mxu1  ;;  %vm1666_vm4 = vcmp.eq.s32.totalorder %v1185_v49, %v2943_v13  ;;  %v1731_v49 = vsel %vm1667_vm5, %v2863_v38, 0.0 }
 0x198   : > { %v1330_v3 = vmax.f32 %v1326_v56, %v3201_v40  ;;  %1114 = vst [vmem:[%s2823_s26 + $0xf8] sm:$0xff] %v3251_v57  ;;  %v1725_v22 = vsel %vm1661_vm15, %v3251_v57, 0.0  ;;  %1146 = vst [vmem:[%s2823_s26 + $0x1f8] sm:$0xff] %v3253_v23 }
 0x199   : > { %v1788_v19 = vadd.f32 %v1787_v12, %v1725_v22  ;;  %v953_v45 = vpop.f32.mrf.mxu0  ;;  %v1081_v47 = vpop.f32.mrf.mxu1  ;;  %v1728_v22 = vsel %vm1664_vm2, %v2839_v25, 0.0  ;;  %v1189_v25 = vadd.s32 320, %v2925_v5 }
 0x19a   : > { %v1334_v32 = vmax.f32 %v1330_v3, %v3251_v57  ;;  %v1187_v3 = vadd.s32 304, %v2925_v5  ;;  %v1730_v47 = vsel %vm1666_vm4, %v2855_v34, 0.0 }
 0x19b   : > { %v1789_v62 = vadd.f32 %v1788_v19, %v1726_v60  ;;  %v1729_v19 = vsel %vm1665_vm3, %v2847_v30, 0.0  ;;  %vm1670_vm8 = vcmp.eq.s32.totalorder %v1189_v25, %v2943_v13  ;;  %v3294_v25 = vld [vmem:[#allocation2] sm:$0x1] }
 0x19c   : > { %v1338_v56 = vmax.f32 %v1334_v32, %v3221_v27  ;;  %vm1668_vm6 = vcmp.eq.s32.totalorder %v1187_v3, %v2943_v13  ;;  %v1733_v3 = vsel %vm1669_vm7, %v2879_v46, 0.0  ;;  %v1734_v1 = vsel %vm1670_vm8, %v2887_v51, 0.0  ;;  %3631 = vst [vmem:[#allocation27_spill] sm:$0xff] %v3294_v25 }
 0x19d   : > { %v1790_v12 = vadd.f32 %v1789_v62, %v1727_v33  ;;  %v1190_v33 = vadd.s32 328, %v2925_v5  ;;  %v1732_v61 = vsel %vm1668_vm6, %v2871_v42, 0.0 }
 0x19e   : > { %v1340_v17 = vmax.f32 %v3238_v48, %v1338_v56 }
 0x19f   : > { %v1791_v26 = vadd.f32 %v1790_v12, %v1728_v22  ;;  %v1191_v22 = vadd.s32 336, %v2925_v5  ;;  %vm1671_vm9 = vcmp.eq.s32.totalorder %v1190_v33, %v2943_v13 }
 0x1a0   : > { %v1341_v21 = vmax.f32 %v3253_v23, %v1340_v17 }
 0x1a1   : > { %v1792_v45 = vadd.f32 %v1791_v26, %v1729_v19  ;;  %v1192_v19 = vadd.s32 344, %v2925_v5  ;;  %vm1672_vm10 = vcmp.eq.s32.totalorder %v1191_v22, %v2943_v13 }
 0x1a2   : > { %v1342_v60 = vrot.slane %v1341_v21, 4 }
 0x1a3   : > { %v1793_v32 = vadd.f32 %v1792_v45, %v1730_v47  ;;  %v1193_v47 = vadd.s32 352, %v2925_v5  ;;  %vm1673_vm11 = vcmp.eq.s32.totalorder %v1192_v19, %v2943_v13 }
 0x1a4   : > { %v1343_v62 = vmax.f32 %v1341_v21, %v1342_v60 }
 0x1a5   : > { %v1794_v56 = vadd.f32 %v1793_v32, %v1731_v49  ;;  %v1735_v32 = vsel %vm1671_vm9, %v2895_v55, 0.0  ;;  %vm1674_vm12 = vcmp.eq.s32.totalorder %v1193_v47, %v2943_v13 }
 0x1a6   : > { %v1344_v12 = vrot.slane %v1343_v62, 2 }
 0x1a7   : > { %v1795_v17 = vadd.f32 %v1794_v56, %v1732_v61  ;;  %v1736_v56 = vsel %vm1672_vm10, %v2903_v59, 0.0 }
 0x1a8   : > { %v1345_v26 = vmax.f32 %v1343_v62, %v1344_v12  ;;  %v1194_v62 = vadd.s32 360, %v2925_v5  ;;  %v1195_v12 = vadd.s32 368, %v2925_v5 }
 0x1a9   : > { %v1796_v21 = vadd.f32 %v1795_v17, %v1733_v3  ;;  %v1737_v17 = vsel %vm1673_vm11, %v2911_v63, 0.0 }
 0x1aa   : > { %v1346_v45 = vrot.slane %v1345_v26, 1  ;;  %vm1675_vm13 = vcmp.eq.s32.totalorder %v1194_v62, %v2943_v13  ;;  %vm1676_vm14 = vcmp.eq.s32.totalorder %v1195_v12, %v2943_v13  ;;  %v1199_v62 = vadd.s32 400, %v2925_v5 }
 0x1ab   : > { %v1797_v60 = vadd.f32 %v1796_v21, %v1734_v1  ;;  %v1738_v21 = vsel %vm1674_vm12, %v2919_v4, 0.0  ;;  %v1197_v1 = vadd.s32 384, %v2925_v5  ;;  %v1739_v47 = vsel %vm1675_vm13, %v2935_v9, 0.0 }
 0x1ac   : > { %v1347_v49 = vmax.f32 %v1345_v26, %v1346_v45  ;;  %v1196_v26 = vadd.s32 376, %v2925_v5  ;;  %v1200_v12 = vadd.s32 408, %v2925_v5  ;;  %vm1680_vm2 = vcmp.eq.s32.totalorder %v1199_v62, %v2943_v13 }
 0x1ad   : > { %v1798_v33 = vadd.f32 %v1797_v60, %v1735_v32  ;;  %v1198_v60 = vadd.s32 392, %v2925_v5  ;;  %vm1678_vm0 = vcmp.eq.s32.totalorder %v1197_v1, %v2943_v13  ;;  %v3636_v62 = vsub.s32 0, %v2925_v5 }
 0x1ae   : > { %v3301_v61 = vmax.f32 %v3294_v25, %v1347_v49  ;;  %vm1677_vm15 = vcmp.eq.s32.totalorder %v1196_v26, %v2943_v13  ;;  %v1740_v49 = vsel %vm1676_vm14, %v2948_v18, 0.0  ;;  %v1201_v26 = vadd.s32 416, %v2925_v5 }
 0x1af   : > { %v1799_v22 = vadd.f32 %v1798_v33, %v1736_v56  ;;  %v3633_v56 = vld [vmem:[#allocation15_spill] sm:$0xff]  ;;  %vm1679_vm1 = vcmp.eq.s32.totalorder %v1198_v60, %v2943_v13  ;;  %vm1681_vm3 = vcmp.eq.s32.totalorder %v1200_v12, %v2943_v13  ;;  %v1203_v60 = vadd.s32 432, %v2925_v5 }
 0x1b0   : > { %3632 = vst [vmem:[#allocation28_spill] sm:$0xff] %v3301_v61  ;;  %1624 = vst [vmem:[#allocation2] sm:$0x1] %v3301_v61  ;;  %v1743_v1 = vsel %vm1679_vm1, %v2993_v6, 0.0  ;;  %vm1682_vm4 = vcmp.eq.s32.totalorder %v1201_v26, %v2943_v13  ;;  %v1204_v25 = vadd.s32 440, %v2925_v5  ;;  %v1205_v26 = vadd.s32 448, %v2925_v5 }
 0x1b1   : > { %v1800_v19 = vadd.f32 %v1799_v22, %v1737_v17  ;;  %v1741_v22 = vsel %vm1677_vm15, %v3633_v56, 0.0  ;;  %vm1684_vm6 = vcmp.eq.s32.totalorder %v1203_v60, %v2943_v13 }
 0x1b2   : > { %vm1685_vm7 = vcmp.eq.s32.totalorder %v1204_v25, %v2943_v13  ;;  %vm1686_vm8 = vcmp.eq.s32.totalorder %v1205_v26, %v2943_v13  ;;  %v1209_v26 = vadd.s32 480, %v2925_v5 }
 0x1b3   : > { %v1801_v45 = vadd.f32 %v1800_v19, %v1738_v21  ;;  %v3634_v19 = vld [vmem:[#allocation16_spill] sm:$0xff]  ;;  %v1749_v60 = vsel %vm1685_vm7, %v3089_v10, 0.0 }
 0x1b4   : > { %v1742_v21 = vsel %vm1678_vm0, %v3634_v19, 0.0  ;;  %vm1690_vm12 = vcmp.eq.s32.totalorder %v1209_v26, %v2943_v13  ;;  %v3640_v26 = vld [vmem:[#allocation10_spill] sm:$0xff] }
 0x1b5   : > { %v1802_v32 = vadd.f32 %v1801_v45, %v1739_v47  ;;  %v1202_v45 = vadd.s32 424, %v2925_v5 }
 0x1b7   : > { %v1803_v33 = vadd.f32 %v1802_v32, %v1740_v49  ;;  %v3635_v49 = vld [vmem:[#allocation17_spill] sm:$0xff]  ;;  %vm1683_vm5 = vcmp.eq.s32.totalorder %v1202_v45, %v2943_v13 }
 0x1b8   : > { %v1744_v3 = vsel %vm1680_vm2, %v3635_v49, 0.0 }
 0x1b9   : > { %v1804_v17 = vadd.f32 %v1803_v33, %v1741_v22  ;;  %v3336_v22 = vrot.slane %v3301_v61, %v3636_v62  ;;  %v1208_v61 = vadd.s32 472, %v2925_v5 }
 0x1bb   : > { %v1805_v47 = vadd.f32 %v1804_v17, %v1742_v21  ;;  %v3637_v17 = vld [vmem:[#allocation19_spill] sm:$0xff]  ;;  %v1362_v62 = vsub.f32 %v2829_v20, %v3336_v22  ;;  %v1750_v20 = vsel %vm1686_vm8, %v3105_v31, 0.0  ;;  %vm1689_vm11 = vcmp.eq.s32.totalorder %v1208_v61, %v2943_v13 }
 0x1bc   : > { %v1745_v21 = vsel %vm1681_vm3, %v3637_v17, 0.0 }
 0x1bd   : > { %v1806_v32 = vadd.f32 %v1805_v47, %v1743_v1  ;;  %v1746_v47 = vsel %vm1682_vm4, %v3041_v39, 0.0  ;;  %v1747_v1 = vsel %vm1683_vm5, %v3057_v11, 0.0 }
 0x1bf   : > { %v1807_v33 = vadd.f32 %v1806_v32, %v1744_v3  ;;  %v1361_v3 = vsub.f32 %v2819_v16, %v3336_v22  ;;  %v1206_v16 = vadd.s32 456, %v2925_v5  ;;  %v1748_v32 = vsel %vm1684_vm6, %v3073_v53, 0.0 }
 0x1c1   : > { %v1808_v12 = vadd.f32 %v1807_v33, %v1745_v21  ;;  %v1207_v21 = vadd.s32 464, %v2925_v5  ;;  %vm1687_vm9 = vcmp.eq.s32.totalorder %v1206_v16, %v2943_v13  ;;  %v1211_v16 = vadd.s32 496, %v2925_v5 }
 0x1c2   : > { %v1751_v10 = vsel %vm1687_vm9, %v3124_v36, 0.0 }
 0x1c3   : > { %v1809_v45 = vadd.f32 %v1808_v12, %v1746_v47  ;;  %v1425_v12 = vmul.f32 1.442695, %v1361_v3  ;;  %vm1688_vm10 = vcmp.eq.s32.totalorder %v1207_v21, %v2943_v13  ;;  %v1210_v3 = vadd.s32 488, %v2925_v5 }
 0x1c4   : > { %v1752_v21 = vsel %vm1688_vm10, %v3149_v0, 0.0  ;;  %vm1692_vm14 = vcmp.eq.s32.totalorder %v1211_v16, %v2943_v13  ;;  %v3641_v16 = vld [vmem:[#allocation11_spill] sm:$0xff] }
 0x1c5   : > { %v1810_v47 = vadd.f32 %v1809_v45, %v1747_v1  ;;  %v1363_v1 = vsub.f32 %v2837_v24, %v3336_v22  ;;  %v1427_v45 = vmul.f32 1.442695, %v1362_v62  ;;  %2298 = vpow2.f32 %v1425_v12  ;;  %v3639_v24 = vld [vmem:[#allocation9_spill] sm:$0xff] }
 0x1c6   : > { %v1365_v62 = vsub.f32 %v3639_v24, %v3336_v22  ;;  %vm1691_vm13 = vcmp.eq.s32.totalorder %v1210_v3, %v2943_v13  ;;  %v1212_v3 = vadd.s32 504, %v2925_v5 }
 0x1c7   : > { %v1811_v33 = vadd.f32 %v1810_v47, %v1748_v32  ;;  %v3638_v32 = vld [vmem:[#allocation8_spill] sm:$0xff]  ;;  %2300 = vpow2.f32 %v1427_v45 }
 0x1c8   : > { %v1364_v47 = vsub.f32 %v3638_v32, %v3336_v22  ;;  %v1753_v32 = vsel %vm1689_vm11, %v3176_v43, 0.0  ;;  %v1433_v12 = vmul.f32 1.442695, %v1365_v62  ;;  %vm1693_vm15 = vcmp.eq.s32.totalorder %v1212_v3, %v2943_v13 }
 0x1c9   : > { %v1812_v25 = vadd.f32 %v1811_v33, %v1749_v60  ;;  %v1429_v60 = vmul.f32 1.442695, %v1363_v1  ;;  %v1754_v1 = vsel %vm1690_vm12, %v3201_v40, 0.0 }
 0x1ca   : > { %v1431_v61 = vmul.f32 1.442695, %v1364_v47  ;;  %v1755_v47 = vsel %vm1691_vm13, %v3221_v27, 0.0 }
 0x1cb   : > { %v1813_v53 = vadd.f32 %v1812_v25, %v1750_v20  ;;  %v1366_v20 = vsub.f32 %v2861_v37, %v3336_v22  ;;  %2302 = vpow2.f32 %v1429_v60  ;;  %v1756_v60 = vsel %vm1692_vm14, %v3238_v48, 0.0 }
 0x1cc   : > { %2304 = vpow2.f32 %v1431_v61 }
 0x1cd   : > { %v1814_v33 = vadd.f32 %v1813_v53, %v1751_v10  ;;  %v1367_v53 = vsub.f32 %v2869_v41, %v3336_v22  ;;  %v1435_v37 = vmul.f32 1.442695, %v1366_v20  ;;  %v1369_v41 = vsub.f32 %v2885_v50, %v3336_v22  ;;  %v3642_v50 = vld [vmem:[#allocation12_spill] sm:$0xff] }
 0x1ce   : > { %2306 = vpow2.f32 %v1433_v12  ;;  %v1371_v20 = vsub.f32 %v2901_v58, %v3336_v22 }
 0x1cf   : > { %v1815_v25 = vadd.f32 %v1814_v33, %v1752_v21  ;;  %v1368_v33 = vsub.f32 %v3640_v26, %v3336_v22  ;;  %v1437_v62 = vmul.f32 1.442695, %v1367_v53  ;;  %2308 = vpow2.f32 %v1435_v37 }
 0x1d0   : > { %v1441_v5 = vmul.f32 1.442695, %v1369_v41  ;;  %v1372_v53 = vsub.f32 %v3642_v50, %v3336_v22  ;;  %v1757_v26 = vsel %vm1693_vm15, %v3253_v23, 0.0 }
 0x1d1   : > { %v1816_v10 = vadd.f32 %v1815_v25, %v1753_v32  ;;  %v1370_v25 = vsub.f32 %v3641_v16, %v3336_v22  ;;  %v1439_v32 = vmul.f32 1.442695, %v1368_v33  ;;  %2310 = vpow2.f32 %v1437_v62 }
 0x1d2   : > { %v2299_v61 = vpop.eup %2298  ;;  %v1445_v33 = vmul.f32 1.442695, %v1371_v20  ;;  %v1447_v13 = vmul.f32 1.442695, %v1372_v53  ;;  %v1377_v53 = vsub.f32 %v2975_v44, %v3336_v22 }
 0x1d3   : > { %v1817_v45 = vadd.f32 %v1816_v10, %v1754_v1  ;;  %2312 = vpow2.f32 %v1439_v32  ;;  %v1443_v12 = vmul.f32 1.442695, %v1370_v25  ;;  %v3643_v1 = vld [vmem:[#allocation13_spill] sm:$0xff] }
 0x1d4   : > { %v2301_v10 = vpop.eup %2300  ;;  %2314 = vpow2.f32 %v1441_v5 }
 0x1d5   : > { %v1818_v24 = vadd.f32 %v1817_v45, %v1755_v47  ;;  %v1373_v45 = vsub.f32 %v3643_v1, %v3336_v22  ;;  %v1553_v37 = vadd.f32 %v2301_v10, %v2299_v61  ;;  %2316 = vpow2.f32 %v1443_v12  ;;  %v3644_v61 = vld [vmem:[#allocation14_spill] sm:$0xff] }
 0x1d6   : > { %2318 = vpow2.f32 %v1445_v33 }
 0x1d7   : > { %v1819_v21 = vadd.f32 %v1818_v24, %v1756_v60  ;;  %v1374_v24 = vsub.f32 %v2933_v8, %v3336_v22  ;;  %v1375_v60 = vsub.f32 %v2946_v15, %v3336_v22  ;;  %v1449_v16 = vmul.f32 1.442695, %v1373_v45 }
 0x1d8   : > { %v2303_v58 = vpop.eup %2302  ;;  %2320 = vpow2.f32 %v1447_v13  ;;  %v1378_v45 = vsub.f32 %v2991_v2, %v3336_v22  ;;  %v1625_v13 = vld [vmem:[#allocation4] sm:$0x1] }
 0x1d9   : > { %v1820_v47 = vadd.f32 %v1819_v21, %v1757_v26  ;;  %v1554_v3 = vadd.f32 %v2303_v58, %v1553_v37  ;;  %v2305_v62 = vpop.eup %2304  ;;  %v1376_v21 = vsub.f32 %v3644_v61, %v3336_v22  ;;  %v1451_v20 = vmul.f32 1.442695, %v1374_v24  ;;  %v3646_v61 = vld [vmem:[#allocation20_spill] sm:$0xff] }
 0x1da   : > { %2322 = vpow2.f32 %v1449_v16  ;;  %v1453_v12 = vmul.f32 1.442695, %v1375_v60  ;;  %v1379_v24 = vsub.f32 %v3007_v35, %v3336_v22  ;;  %v3645_v60 = vld [vmem:[#allocation18_spill] sm:$0xff] }
 0x1db   : > { %v1821_v41 = vrot.slane %v1820_v47, 4  ;;  %v1555_v25 = vadd.f32 %v2305_v62, %v1554_v3  ;;  %v2307_v5 = vpop.eup %2306  ;;  %2324 = vpow2.f32 %v1451_v20  ;;  %v1455_v33 = vmul.f32 1.442695, %v1376_v21 }
 0x1dc   : > { %v2309_v50 = vpop.eup %2308  ;;  %2326 = vpow2.f32 %v1453_v12  ;;  %v1457_v3 = vmul.f32 1.442695, %v1377_v53  ;;  %v1380_v16 = vsub.f32 %v3645_v60, %v3336_v22  ;;  %v1381_v21 = vsub.f32 %v3646_v61, %v3336_v22 }
 0x1dd   : > { %v1822_v32 = vadd.f32 %v1821_v41, %v1820_v47  ;;  %v1556_v10 = vadd.f32 %v2307_v5, %v1555_v25  ;;  %2328 = vpow2.f32 %v1455_v33  ;;  %v1459_v25 = vmul.f32 1.442695, %v1378_v45 }
 0x1de   : > { %v2311_v26 = vpop.eup %2310  ;;  %2330 = vpow2.f32 %v1457_v3  ;;  %v1461_v20 = vmul.f32 1.442695, %v1379_v24  ;;  %v1463_v53 = vmul.f32 1.442695, %v1380_v16  ;;  %v3649_v3 = vld [vmem:[#allocation25_spill] sm:$0xff] }
 0x1df   : > { %v1823_v8 = vrot.slane %v1822_v32, 2  ;;  %v1557_v1 = vadd.f32 %v2309_v50, %v1556_v10  ;;  %2332 = vpow2.f32 %v1459_v25 }
 0x1e0   : > { %v2313_v58 = vpop.eup %2312  ;;  %2334 = vpow2.f32 %v1461_v20  ;;  %v1388_v20 = vsub.f32 %v3173_v54, %v3336_v22  ;;  %v3650_v54 = vld [vmem:[#allocation26_spill] sm:$0xff] }
 0x1e1   : > { %v1824_v15 = vadd.f32 %v1823_v8, %v1822_v32  ;;  %v1558_v37 = vadd.f32 %v2311_v26, %v1557_v1  ;;  %v2315_v62 = vpop.eup %2314  ;;  %v3647_v8 = vld [vmem:[#allocation21_spill] sm:$0xff]  ;;  %v1465_v26 = vmul.f32 1.442695, %v1381_v21  ;;  %2336 = vpow2.f32 %v1463_v53 }
 0x1e2   : > { %v2317_v5 = vpop.eup %2316  ;;  %v1382_v50 = vsub.f32 %v3647_v8, %v3336_v22 }
 0x1e3   : > { %v1825_v47 = vrot.slane %v1824_v15, 1  ;;  %v1559_v44 = vadd.f32 %v2313_v58, %v1558_v37  ;;  %v2319_v10 = vpop.eup %2318  ;;  %v3648_v37 = vld [vmem:[#allocation23_spill] sm:$0xff]  ;;  %2338 = vpow2.f32 %v1465_v26 }
 0x1e4   : > { %v1467_v58 = vmul.f32 1.442695, %v1382_v50 }
 0x1e5   : > { %v1826_v41 = vadd.f32 %v1825_v47, %v1824_v15  ;;  %v1560_v2 = vadd.f32 %v2315_v62, %v1559_v44  ;;  %v2321_v1 = vpop.eup %2320  ;;  %v1383_v15 = vsub.f32 %v3071_v52, %v3336_v22  ;;  %v1384_v47 = vsub.f32 %v3648_v37, %v3336_v22 }
 0x1e6   : > { %v1385_v44 = vsub.f32 %v3649_v3, %v3336_v22  ;;  %v1386_v52 = vsub.f32 %v3122_v14, %v3336_v22  ;;  %2340 = vpow2.f32 %v1467_v58  ;;  %v1389_v14 = vsub.f32 %v3198_v28, %v3336_v22 }
 0x1e7   : > { %v1827_v32 = vadd.f32 %v1826_v41, %v1625_v13  ;;  %v1561_v35 = vadd.f32 %v2317_v5, %v1560_v2  ;;  %v2323_v33 = vpop.eup %2322  ;;  %v1469_v41 = vmul.f32 1.442695, %v1383_v15  ;;  %v1471_v16 = vmul.f32 1.442695, %v1384_v47 }
 0x1e8   : > { %v2325_v13 = vpop.eup %2324  ;;  %v1473_v5 = vmul.f32 1.442695, %v1385_v44  ;;  %v1392_v47 = vsub.f32 %v3251_v57, %v3336_v22 }
 0x1e9   : > { %1828 = vst [vmem:[#allocation4] sm:$0x1] %v1827_v32  ;;  %v1562_v12 = vadd.f32 %v2319_v10, %v1561_v35  ;;  %v2327_v60 = vpop.eup %2326  ;;  %v1387_v32 = vsub.f32 %v3147_v29, %v3336_v22  ;;  %2342 = vpow2.f32 %v1469_v41  ;;  %v1475_v35 = vmul.f32 1.442695, %v1386_v52 }
 0x1ea   : > { %v2329_v2 = vpop.eup %2328  ;;  %2344 = vpow2.f32 %v1471_v16  ;;  %v1390_v29 = vsub.f32 %v3218_v7, %v3336_v22  ;;  %v1487_v57 = vmul.f32 1.442695, %v1392_v47 }
 0x1eb   : > { %v1563_v45 = vadd.f32 %v2321_v1, %v1562_v12  ;;  %v2331_v21 = vpop.eup %2330  ;;  %2346 = vpow2.f32 %v1473_v5  ;;  %v1477_v50 = vmul.f32 1.442695, %v1387_v32  ;;  %v1479_v1 = vmul.f32 1.442695, %v1388_v20 }
 0x1ec   : > { %v2333_v8 = vpop.eup %2332  ;;  %2348 = vpow2.f32 %v1475_v35  ;;  %v1483_v58 = vmul.f32 1.442695, %v1390_v29 }
 0x1ed   : > { %v1564_v24 = vadd.f32 %v2323_v33, %v1563_v45  ;;  %v2335_v12 = vpop.eup %2334  ;;  %v1391_v45 = vsub.f32 %v3650_v54, %v3336_v22  ;;  %2350 = vpow2.f32 %v1477_v50  ;;  %v1481_v33 = vmul.f32 1.442695, %v1389_v14 }
 0x1ee   : > { %v2337_v26 = vpop.eup %2336  ;;  %2352 = vpow2.f32 %v1479_v1 }
 0x1ef   : > { %v1565_v62 = vadd.f32 %v2325_v13, %v1564_v24  ;;  %v2430_v13 = vld [vmem:[%s2823_s26 + $0x100] sm:$0xff]  ;;  %2354 = vpow2.f32 %v1481_v33  ;;  %v1485_v44 = vmul.f32 1.442695, %v1391_v45 }
 0x1f0   : > { %v2339_v37 = vpop.eup %2338  ;;  %v1393_v3 = vsub.f32 %v2430_v13, %v3336_v22  ;;  %2356 = vpow2.f32 %v1483_v58 }
 0x1f1   : > { %v1566_v25 = vadd.f32 %v2327_v60, %v1565_v62  ;;  %v2431_v60 = vld [vmem:[%s2823_s26 + $0x108] sm:$0xff]  ;;  %2358 = vpow2.f32 %v1485_v44 }
 0x1f2   : > { %v1394_v52 = vsub.f32 %v2431_v60, %v3336_v22  ;;  %v1489_v5 = vmul.f32 1.442695, %v1393_v3 }
 0x1f3   : > { %v1567_v61 = vadd.f32 %v2329_v2, %v1566_v25  ;;  %v2341_v24 = vpop.eup %2340  ;;  %v2432_v2 = vld [vmem:[%s2823_s26 + $0x110] sm:$0xff] }
 0x1f4   : > { %v1395_v32 = vsub.f32 %v2432_v2, %v3336_v22 }
 0x1f5   : > { %v1568_v10 = vadd.f32 %v2331_v21, %v1567_v61 }
 0x1f6   : > { %v2343_v62 = vpop.eup %2342 }
 0x1f7   : > { %v1569_v53 = vadd.f32 %v2333_v8, %v1568_v10  ;;  %v2345_v25 = vpop.eup %2344 }
 0x1f8   : > { %v2347_v21 = vpop.eup %2346 }
 0x1f9   : > { %v1570_v15 = vadd.f32 %v2335_v12, %v1569_v53 }
 0x1fb   : > { %v1571_v28 = vadd.f32 %v2337_v26, %v1570_v15 }
 0x1fd   : > { %v1572_v7 = vadd.f32 %v2339_v37, %v1571_v28 }
 0x1ff   : > { %v1573_v41 = vadd.f32 %v2341_v24, %v1572_v7 }
 0x201   : > { %v1574_v16 = vadd.f32 %v2343_v62, %v1573_v41 }
 0x203   : > { %v1575_v61 = vadd.f32 %v2345_v25, %v1574_v16 }
 0x204   : > { %2448 = shalt.err (!%p2445_p5)
}
 0x205   : > { %s2449_s22 = scalar_lea.hbm %s3454_s10, 8192  ;;  %s2453_s29 = scalar_lea.hbm %s3583_s3, 16384 }
 0x206   : > { %p2450_p6 = scmp.ne.s32.totalorder %s3454_s10, %s2449_s22  ;;  %p2454_p10 = scmp.lt.s32.totalorder %s3454_s10, %s3583_s3 }
 0x207   : > { %p2455_p11 = scmp.lt.s32.totalorder %s2453_s29, %s2449_s22 }
 0x208   : > { %p2451_p7 = pnand %p2450_p6, %p2583_p4 }
 0x209   : > { %p2456_p12 = por %p2455_p11, %p2454_p10 }
 0x20a   : > { %p2452_p9 = pneg %p2451_p7 }
 0x20c   : > { %p2457_p13 = pnand %p2456_p12, %p2452_p9 }
 0x20e   : > { %2460 = shalt.err (!%p2457_p13)
}
 0x20f   : > { %s2516_s8 = smov 128   ;;  %s2517_s9 = smov 8   ;;  %v1396_v20 = vsub.f32 %v2847_v30, %v3336_v22  ;;  %2360 = vpow2.f32 %v1487_v57  ;;  %v1491_v35 = vmul.f32 1.442695, %v1394_v52  ;;  %v1576_v10 = vadd.f32 %v2347_v21, %v1575_v61  ;;  %v2349_v8 = vpop.eup %2348 }
 0x210   : > { %2119 = dma.vmem_to_hbm [thread:$0]  (%p2583_p4), %s3457_s11, 8192, %s3454_s10, %s3463_s18, %s2516_s8, %s2516_s8, %s2517_s9   ;;  %v1397_v14 = vsub.f32 %v2855_v34, %v3336_v22  ;;  %2362 = vpow2.f32 %v1489_v5  ;;  %v1493_v50 = vmul.f32 1.442695, %v1395_v32  ;;  %v2351_v12 = vpop.eup %2350  ;;  %v1398_v29 = vsub.f32 %v2863_v38, %v3336_v22 }
 0x211   : > { %v1577_v53 = vadd.f32 %v2349_v8, %v1576_v10  ;;  %2364 = vpow2.f32 %v1491_v35  ;;  %v1495_v1 = vmul.f32 1.442695, %v1396_v20  ;;  %v2353_v26 = vpop.eup %2352  ;;  %v1399_v30 = vsub.f32 %v2871_v42, %v3336_v22  ;;  %s305_s11 = scalar_lea.vmem %s3584_s4, %s2603_s5 }
 0x212   : > { %2366 = vpow2.f32 %v1493_v50  ;;  %v1497_v54 = vmul.f32 1.442695, %v1397_v14  ;;  %v2355_v33 = vpop.eup %2354  ;;  %v1400_v34 = vsub.f32 %v2879_v46, %v3336_v22  ;;  %v1499_v28 = vmul.f32 1.442695, %v1398_v29 }
 0x213   : > { %v1578_v15 = vadd.f32 %v2351_v12, %v1577_v53  ;;  %2368 = vpow2.f32 %v1495_v1  ;;  %v2357_v47 = vpop.eup %2356  ;;  %v1401_v38 = vsub.f32 %v2887_v51, %v3336_v22  ;;  %v1501_v58 = vmul.f32 1.442695, %v1399_v30 }
 0x214   : > { %2370 = vpow2.f32 %v1497_v54  ;;  %v2359_v24 = vpop.eup %2358  ;;  %v1402_v42 = vsub.f32 %v2895_v55, %v3336_v22  ;;  %v1503_v13 = vmul.f32 1.442695, %v1400_v34  ;;  %v1403_v46 = vsub.f32 %v2903_v59, %v3336_v22 }
 0x215   : > { %v1579_v45 = vadd.f32 %v2353_v26, %v1578_v15  ;;  %2372 = vpow2.f32 %v1499_v28  ;;  %v1505_v41 = vmul.f32 1.442695, %v1401_v38  ;;  %v1404_v51 = vsub.f32 %v2911_v63, %v3336_v22 }
 0x216   : > { %2374 = vpow2.f32 %v1501_v58  ;;  %v1507_v52 = vmul.f32 1.442695, %v1402_v42  ;;  %v1405_v55 = vsub.f32 %v2919_v4, %v3336_v22  ;;  %v1509_v25 = vmul.f32 1.442695, %v1403_v46 }
 0x217   : > { %v1580_v37 = vadd.f32 %v2355_v33, %v1579_v45  ;;  %2376 = vpow2.f32 %v1503_v13  ;;  %v1406_v59 = vsub.f32 %v2935_v9, %v3336_v22  ;;  %v1511_v5 = vmul.f32 1.442695, %v1404_v51 }
 0x218   : > { %2378 = vpow2.f32 %v1505_v41  ;;  %v1407_v63 = vsub.f32 %v2948_v18, %v3336_v22  ;;  %v1513_v20 = vmul.f32 1.442695, %v1405_v55  ;;  %v1408_v4 = vsub.f32 %v3633_v56, %v3336_v22 }
 0x219   : > { %v1581_v7 = vadd.f32 %v2357_v47, %v1580_v37  ;;  %2380 = vpow2.f32 %v1507_v52  ;;  %v1515_v8 = vmul.f32 1.442695, %v1406_v59  ;;  %v1409_v9 = vsub.f32 %v3634_v19, %v3336_v22 }
 0x21a   : > { %2382 = vpow2.f32 %v1509_v25  ;;  %v1517_v53 = vmul.f32 1.442695, %v1407_v63  ;;  %v1410_v18 = vsub.f32 %v2993_v6, %v3336_v22  ;;  %v1519_v1 = vmul.f32 1.442695, %v1408_v4 }
 0x21b   : > { %v1582_v3 = vadd.f32 %v2359_v24, %v1581_v7  ;;  %2384 = vpow2.f32 %v1511_v5  ;;  %v1411_v56 = vsub.f32 %v3635_v49, %v3336_v22  ;;  %v1521_v30 = vmul.f32 1.442695, %v1409_v9 }
 0x21c   : > { %v2361_v44 = vpop.eup %2360  ;;  %2386 = vpow2.f32 %v1513_v20  ;;  %v1412_v19 = vsub.f32 %v3637_v17, %v3336_v22  ;;  %v1523_v33 = vmul.f32 1.442695, %v1410_v18  ;;  %v1413_v6 = vsub.f32 %v3041_v39, %v3336_v22  ;;  %v3651_v17 = vld [vmem:[#allocation22_spill] sm:$0xff]  ;;  %v3652_v39 = vld [vmem:[#allocation24_spill] sm:$0xff] }
 0x21d   : > { %v1583_v62 = vadd.f32 %v2361_v44, %v1582_v3  ;;  %v2363_v60 = vpop.eup %2362  ;;  %2388 = vpow2.f32 %v1515_v8  ;;  %v1525_v37 = vmul.f32 1.442695, %v1411_v56  ;;  %v1414_v49 = vsub.f32 %v3057_v11, %v3336_v22 }
 0x21e   : > { %v2365_v16 = vpop.eup %2364  ;;  %2390 = vpow2.f32 %v1517_v53  ;;  %v1527_v58 = vmul.f32 1.442695, %v1412_v19  ;;  %v1415_v42 = vsub.f32 %v3651_v17, %v3336_v22  ;;  %v1529_v13 = vmul.f32 1.442695, %v1413_v6 }
 0x21f   : > { %v1584_v57 = vadd.f32 %v2363_v60, %v1583_v62  ;;  %v2367_v32 = vpop.eup %2366  ;;  %2392 = vpow2.f32 %v1519_v1  ;;  %v1416_v46 = vsub.f32 %v3652_v39, %v3336_v22  ;;  %v1531_v41 = vmul.f32 1.442695, %v1414_v49 }
 0x220   : > { %v2369_v21 = vpop.eup %2368  ;;  %2394 = vpow2.f32 %v1521_v30  ;;  %v1417_v11 = vsub.f32 %v3105_v31, %v3336_v22  ;;  %v1533_v51 = vmul.f32 1.442695, %v1415_v42  ;;  %v3653_v31 = vsub.f32 %v3149_v0, %v3336_v22 }
 0x221   : > { %v1585_v2 = vadd.f32 %v2365_v16, %v1584_v57  ;;  %v2371_v10 = vpop.eup %2370  ;;  %2396 = vpow2.f32 %v1523_v33  ;;  %v1418_v16 = vsub.f32 %v3124_v36, %v3336_v22  ;;  %v1535_v55 = vmul.f32 1.442695, %v1416_v46 }
 0x222   : > { %v2373_v50 = vpop.eup %2372  ;;  %2398 = vpow2.f32 %v1525_v37  ;;  %v1541_v20 = vmul.f32 1.442695, %v3653_v31  ;;  %v3654_v36 = vsub.f32 %v3176_v43, %v3336_v22  ;;  %v3656_v0 = vsub.f32 %v3221_v27, %v3336_v22 }
 0x223   : > { %v1586_v61 = vadd.f32 %v2367_v32, %v1585_v2  ;;  %v2375_v29 = vpop.eup %2374  ;;  %2400 = vpow2.f32 %v1527_v58  ;;  %v1537_v32 = vmul.f32 1.442695, %v1417_v11  ;;  %v3657_v43 = vsub.f32 %v3238_v48, %v3336_v22  ;;  %v1350_v11 = vld [vmem:[#allocation3] sm:$0x1] }
 0x224   : > { %v2377_v26 = vpop.eup %2376  ;;  %2402 = vpow2.f32 %v1529_v13  ;;  %v1543_v4 = vmul.f32 1.442695, %v3654_v36 }
 0x225   : > { %v1587_v35 = vadd.f32 %v2369_v21, %v1586_v61  ;;  %v2379_v45 = vpop.eup %2378  ;;  %2404 = vpow2.f32 %v1531_v41  ;;  %v1539_v61 = vmul.f32 1.442695, %v1418_v16 }
 0x226   : > { %v2381_v28 = vpop.eup %2380  ;;  %2406 = vpow2.f32 %v1533_v51 }
 0x227   : > { %v1588_v14 = vadd.f32 %v2371_v10, %v1587_v35  ;;  %v2383_v38 = vpop.eup %2382  ;;  %2408 = vpow2.f32 %v1535_v55 }
 0x228   : > { %v2385_v24 = vpop.eup %2384  ;;  %2410 = vpow2.f32 %v1537_v32  ;;  %v1832_v32 = vld [vmem:[#allocation2] sm:$0x1] }
 0x229   : > { %v1589_v12 = vadd.f32 %v2373_v50, %v1588_v14  ;;  %v2387_v44 = vpop.eup %2386  ;;  %2412 = vpow2.f32 %v1539_v61  ;;  %v3655_v50 = vsub.f32 %v3201_v40, %v3336_v22  ;;  %v3658_v40 = vsub.f32 %v3253_v23, %v3336_v22  ;;  %v2433_v61 = vld [vmem:[%s2931_s6] sm:$0x1] }
 0x22a   : > { %v2389_v60 = vpop.eup %2388  ;;  %2414 = vpow2.f32 %v1541_v20  ;;  %vm1839_vm0 = vcmp.ge.s32.totalorder %v2433_v61, 0 }
 0x22b   : > { %v1590_v15 = vadd.f32 %v2375_v29, %v1589_v12  ;;  %v2391_v57 = vpop.eup %2390  ;;  %v1545_v9 = vmul.f32 1.442695, %v3655_v50  ;;  %2416 = vpow2.f32 %v1543_v4  ;;  %v1547_v29 = vmul.f32 1.442695, %v3656_v0 }
 0x22c   : > { %v2393_v2 = vpop.eup %2392  ;;  %v1551_v30 = vmul.f32 1.442695, %v3658_v40 }
 0x22d   : > { %v1591_v54 = vadd.f32 %v2377_v26, %v1590_v15  ;;  %v2395_v5 = vpop.eup %2394  ;;  %2418 = vpow2.f32 %v1545_v9  ;;  %v1549_v15 = vmul.f32 1.442695, %v3657_v43 }
 0x22e   : > { %v2397_v63 = vpop.eup %2396  ;;  %2420 = vpow2.f32 %v1547_v29 }
 0x22f   : > { %v1592_v34 = vadd.f32 %v2379_v45, %v1591_v54  ;;  %v2399_v10 = vpop.eup %2398  ;;  %2422 = vpow2.f32 %v1549_v15 }
 0x230   : > { %v2401_v14 = vpop.eup %2400  ;;  %2424 = vpow2.f32 %v1551_v30 }
 0x231   : > { %v1593_v47 = vadd.f32 %v2381_v28, %v1592_v34  ;;  %v2403_v12 = vpop.eup %2402 }
 0x232   : > { %v2405_v1 = vpop.eup %2404 }
 0x233   : > { %v1594_v7 = vadd.f32 %v2383_v38, %v1593_v47  ;;  %v2407_v56 = vpop.eup %2406  ;;  %v3659_v47 = vld [vmem:[#allocation27_spill] sm:$0xff]  ;;  %v3660_v38 = vld [vmem:[#allocation28_spill] sm:$0xff] }
 0x234   : > { %v2409_v45 = vpop.eup %2408  ;;  %v3661_v49 = vsub.f32 %v3659_v47, %v3660_v38 }
 0x235   : > { %v1595_v3 = vadd.f32 %v2385_v24, %v1594_v7  ;;  %v2411_v27 = vpop.eup %2410 }
 0x236   : > { %v2413_v34 = vpop.eup %2412  ;;  %v1352_v58 = vmul.f32 1.442695, %v3661_v49 }
 0x237   : > { %v1596_v62 = vadd.f32 %v2387_v44, %v1595_v3  ;;  %v2415_v6 = vpop.eup %2414 }
 0x238   : > { %v2417_v48 = vpop.eup %2416  ;;  %2426 = vpow2.f32 %v1352_v58 }
 0x239   : > { %v1597_v52 = vadd.f32 %v2389_v60, %v1596_v62 }
 0x23a   : > { %v2419_v24 = vpop.eup %2418 }
 0x23b   : > { %v1598_v25 = vadd.f32 %v2391_v57, %v1597_v52  ;;  %v2421_v22 = vpop.eup %2420 }
 0x23c   : > { %v2423_v42 = vpop.eup %2422 }
 0x23d   : > { %v1599_v59 = vadd.f32 %v2393_v2, %v1598_v25  ;;  %v2425_v3 = vpop.eup %2424 }
 0x23f   : > { %v1600_v21 = vadd.f32 %v2395_v5, %v1599_v59  ;;  %v1837_v5 = vld [vmem:[#allocation4] sm:$0x1] }
 0x241   : > { %v1601_v35 = vadd.f32 %v2397_v63, %v1600_v21 }
 0x243   : > { %v1602_v8 = vadd.f32 %v2399_v10, %v1601_v35 }
 0x245   : > { %v1603_v53 = vadd.f32 %v2401_v14, %v1602_v8  ;;  %v2427_v60 = vpop.eup %2426 }
 0x246   : > { %v1354_v52 = vmul.f32 %v2427_v60, %v1350_v11 }
 0x247   : > { %v1604_v18 = vadd.f32 %v2403_v12, %v1603_v53 }
 0x249   : > { %v1605_v26 = vadd.f32 %v2405_v1, %v1604_v18 }
 0x24b   : > { %v1606_v54 = vadd.f32 %v2407_v56, %v1605_v26 }
 0x24d   : > { %v1607_v19 = vadd.f32 %v2409_v45, %v1606_v54 }
 0x24f   : > { %v1608_v33 = vadd.f32 %v2411_v27, %v1607_v19 }
 0x251   : > { %v1609_v28 = vadd.f32 %v2413_v34, %v1608_v33 }
 0x253   : > { %v1610_v37 = vadd.f32 %v2415_v6, %v1609_v28 }
 0x255   : > { %v1611_v7 = vadd.f32 %v2417_v48, %v1610_v37 }
 0x257   : > { %v1612_v23 = vadd.f32 %v2419_v24, %v1611_v7 }
 0x259   : > { %v1613_v17 = vadd.f32 %v2421_v22, %v1612_v23 }
 0x25b   : > { %v1614_v13 = vadd.f32 %v2423_v42, %v1613_v17 }
 0x25d   : > { %v1615_v44 = vadd.f32 %v2425_v3, %v1614_v13 }
 0x25f   : > { %v1616_v39 = vrot.slane %v1615_v44, 4 }
 0x261   : > { %v1617_v46 = vadd.f32 %v1616_v39, %v1615_v44 }
 0x263   : > { %v1618_v41 = vrot.slane %v1617_v46, 2 }
 0x265   : > { %v1619_v62 = vadd.f32 %v1618_v41, %v1617_v46 }
 0x267   : > { %v1620_v51 = vrot.slane %v1619_v62, 1 }
 0x269   : > { %v1621_v57 = vadd.f32 %v1620_v51, %v1619_v62 }
 0x26b   : > { %v1622_v16 = vadd.f32 %v1621_v57, %v1354_v52 }
 0x26d   : > { %1623 = vst [vmem:[#allocation3] sm:$0x1] %v1622_v16 }
 0x274   : > { %v1833_v55 = vld [vmem:[#allocation3] sm:$0x1] }
 0x275   : > { %2428 = vlog2.f32 %v1833_v55 }
 0x282   : > { %v2429_v25 = vpop.eup %2428 }
 0x283   : > { %v1835_v2 = vmul.f32 0.6931472, %v2429_v25 }
 0x285   : > { %v1836_v59 = vadd.f32 %v1835_v2, %v1832_v32 }
 0x287   : > { %v1838_v21 = vsub.f32 %v1836_v59, %v1837_v5 }
 0x289   : > { %v1840_v63 = vsel %vm1839_vm0, %v1838_v21, 0.0 }
 0x28a   : > { %1841 = vst [vmem:[%s305_s11] sm:$0x1] %v1840_v63 }
 0x28b PF: > { %p2125_p4 = scmp.ge.s32.totalorder %s2511_s20, 2  ;;  %s1883_s18 = sand.u32 1, %s2491_s15  }
 0x28c   : > { %s1884_s12 = scalar_lea.sflag [#allocation6], %s1883_s18 }
 0x28d   : > { %p2122_p0 = pnand %p2125_p4, %p2590_p8 }
 0x28f   : > { %p2123_p1 = pneg %p2122_p0 }
 0x291   : > { %2486 = dma.done.wait (%p2123_p1), %s1884_s12, 8192  }
 0x292   : > { %2488 = vsyncadd (%p2123_p1), %s1884_s12, 4294959104  ;;  %s18_s20 = sadd.s32 1, %s2511_s20   ;;  %s3662_s15 = smov %s2495_s16 }
 0x293   : > { %p15_p2 = scmp.ge.s32.totalorder %s18_s20, 4   ;;  %s3663_s16 = smov %s2499_s17 }
 0x294   : > { %s3664_s17 = smov %s2596_s28  ;;  %s3665_s18 = smov %s2507_s19 }
 0x295   : > { %s3666_s19 = smov %s3668_s23  ;;  %17 = sbr.rel (!%p15_p2) target bundleno = 4 (0x4), region = 93 }
 0x29a   :  { %1898 = vsyncpa [#allocation6], 1 }
 0x29b   :  { %1900 = vsyncpa [#allocation6 + $0x1], 1 }

</bundles_post_ra>
